<compile_context>
chip_gen: v6e
topology: v6e:2x2x1
jax: 0.10.0
libtpu: 0.0.40
codegen_flags: <defaults>
</compile_context>

<pallas_src>
import jax
import jax.numpy as jnp
from jax.experimental import pallas as pl
from jax.experimental.pallas import tpu as pltpu


# ---------------------------------------------------------------------------
# Fused forward kernel
# ---------------------------------------------------------------------------
def _fused_forward_kernel(
    x_ref,        # (N, nFeat)            f32
    a0_ref,       # (N, N) adj5           bf16
    a1_ref,       # (N, N) adj4           bf16
    a2_ref,       # (N, N) adj3           bf16
    a3_ref,       # (N, N) adj1           bf16
    w1c_ref,      # (nFeat, 4*nhid2)      concat gc1/gc4/gc7/gc10
    b1c_ref,      # (1, 4*nhid2)
    w2bd_ref,     # (4, 4*nhid2, 4*nhid3) per-branch block-diag gc2/gc5/gc8/gc11
    b2c_ref,      # (1, 4*nhid3)
    w3bd_ref,     # (4, 4*nhid3, 4*nhid4) per-branch block-diag gc3/gc6/gc9/gc12
    b3c_ref,      # (1, 4*nhid4)
    wsimp_ref,    # (4*nhid4, nhid4)      sim_dense, zero-padded rows
    bsim_ref,     # (1, nhid4)
    we1p_ref,     # (4*nhid4, nhid2)      ensemble1 rows for x1/x4, zero-padded
    we1s_ref,     # (nhid4, nhid2)        ensemble1 rows for xsim
    be1_ref,      # (1, nhid2)
    we2_ref,      # (nhid2, nhid3)
    be2_ref,      # (1, nhid3)
    we3_ref,      # (nhid3, nhid4)
    be3_ref,      # (1, nhid4)
    whdx_ref,     # (4*nhid4, 6*nclass)   dense1/dense2/dense3/dense3, block-diag
    whds_ref,     # (nhid4, 6*nclass)     densesim cols only
    whde_ref,     # (nhid4, 6*nclass)     dense4 cols only
    bhd_ref,      # (1, 6*nclass)
    out_ref,      # (N, 6*nclass)         lane-contiguous output slab
):
    f32, bf16 = jnp.float32, jnp.bfloat16
    dot = lambda a, b: jnp.dot(a, b, preferred_element_type=f32)
    relu = lambda v: jnp.maximum(v, 0.0)

    x = x_ref[...]
    # Layer-1 input projection for all four branches fused: (N,nFeat)@(nFeat,4*nhid2)
    s1 = dot(x, w1c_ref[...]).astype(bf16)          # bf16 operand for the adj matmuls
    b1c = b1c_ref[...]
    b2c = b2c_ref[...]

    adj_refs = (a0_ref, a1_ref, a2_ref, a3_ref)     # branch order x1..x4
    N = x.shape[0]
    nh4x4 = w3bd_ref.shape[2]

    # Lane-concatenated GCN outputs: xcat = [x1 | x2 | x3 | x4] (N, 4*nhid4).
    xcat = jnp.zeros((N, nh4x4), f32)
    for b in range(4):
        adj = adj_refs[b][...]                                       # bf16 (N,N)
        # layer 1 at full 128-lane width (only branch b's slice is "real";
        # the block-diag layer-2 weight zeroes out the rest).
        t = relu(dot(adj, s1) + b1c)                                 # (N, 4*nhid2) f32
        # layer 2: zero-padded block-diag weight keeps output lane-aligned.
        z = relu(dot(adj, dot(t, w2bd_ref[b]).astype(bf16)) + b2c)   # (N, 4*nhid3) f32
        # layer 3: block-diag weight -> contribution only in lane slice b.
        xcat = xcat + dot(adj, dot(z, w3bd_ref[b]).astype(bf16))     # (N, 4*nhid4) f32
    xcat = xcat + b3c_ref[...]

    # sim head: sim_dense(cat(x2, x3)) via zero-padded rows (concat-free).
    xsim = dot(xcat, wsimp_ref[...]) + bsim_ref[...]                 # (N, nhid4)

    # ensemble head: ensemble1(cat(x1, xsim, x4)), concat-free.
    xe = relu(dot(xcat, we1p_ref[...]) + dot(xsim, we1s_ref[...]) + be1_ref[...])
    xe = relu(dot(xe, we2_ref[...]) + be2_ref[...])
    xe = relu(dot(xe, we3_ref[...]) + be3_ref[...])

    # Six heads fused into three lane-aligned matmuls -> one (N, 6*nclass) slab.
    heads = (dot(relu(xcat), whdx_ref[...])
             + dot(relu(xsim), whds_ref[...])
             + dot(xe, whde_ref[...])
             + bhd_ref[...])
    out_ref[...] = heads.astype(out_ref.dtype)


# ---------------------------------------------------------------------------
# Wrapper around the single pallas_call
# ---------------------------------------------------------------------------
def gcn_decay_rep2_forward(packed, x, adj1, adj2, adj3, adj4, adj5):
    del adj2  # present in the PyTorch signature but unused in forward()
    N = x.shape[0]
    out_cols = packed["bhd"].shape[1]          # 6 * nclass
    nclass = out_cols // 6

    # Branch order (x1..x4) = (adj5, adj4, adj3, adj1); bf16 MXU operands.
    adjs = tuple(a.astype(jnp.bfloat16) for a in (adj5, adj4, adj3, adj1))

    args = (x, *adjs,
            packed["w1c"], packed["b1c"], packed["w2bd"], packed["b2c"],
            packed["w3bd"], packed["b3c"], packed["wsimp"], packed["bsim"],
            packed["we1p"], packed["we1s"], packed["be1"],
            packed["we2"], packed["be2"], packed["we3"], packed["be3"],
            packed["whdx"], packed["whds"], packed["whde"], packed["bhd"])

    # --- VMEM budget & cost estimate (shapes are static under jit) ----------
    in_bytes = sum(a.size * a.dtype.itemsize for a in args)
    out_bytes = N * out_cols * 4
    act_bytes = 10 * N * max(packed["w1c"].shape[1], 128) * 4   # s1/t/z/xcat headroom
    vmem_limit = int(min(max(2 * (in_bytes + out_bytes + act_bytes),
                             16 * 1024 * 1024), 64 * 1024 * 1024))

    adj_width = (packed["w1c"].shape[1] + packed["b2c"].shape[1]
                 + packed["b3c"].shape[1])
    dense_weight_elems = sum(packed[k].size for k in
                             ("w1c", "w2bd", "w3bd", "wsimp", "we1p", "we1s",
                              "we2", "we3", "whdx", "whds", "whde"))
    flops = int(4 * 2 * N * N * adj_width + 2 * N * dense_weight_elems)

    out = pl.pallas_call(
        _fused_forward_kernel,
        out_shape=jax.ShapeDtypeStruct((N, out_cols), jnp.float32),
        in_specs=[pl.BlockSpec(memory_space=pltpu.MemorySpace.VMEM)] * len(args),
        out_specs=pl.BlockSpec(memory_space=pltpu.MemorySpace.VMEM),
        compiler_params=pltpu.CompilerParams(vmem_limit_bytes=vmem_limit),
        cost_estimate=pl.CostEstimate(flops=flops, transcendentals=0,
                                      bytes_accessed=int(in_bytes + out_bytes)),
    )(*args)

    # Unpack the lane-contiguous slab into the six module outputs.
    return tuple(out[:, h * nclass:(h + 1) * nclass] for h in range(6))


# ---------------------------------------------------------------------------
# Parameter construction (PyTorch-like uniform init) and packing
# ---------------------------------------------------------------------------
def _uniform(key, shape, bound):
    return jax.random.uniform(key, shape, jnp.float32, -bound, bound)


def init_params(key, nFeat, nhid2, nhid3, nhid4, nclass):
    params = {}
    specs = {
        "gc1": (nFeat, nhid2), "gc2": (nhid2, nhid3), "gc3": (nhid3, nhid4),
        "gc4": (nFeat, nhid2), "gc5": (nhid2, nhid3), "gc6": (nhid3, nhid4),
        "gc7": (nFeat, nhid2), "gc8": (nhid2, nhid3), "gc9": (nhid3, nhid4),
        "gc10": (nFeat, nhid2), "gc11": (nhid2, nhid3), "gc12": (nhid3, nhid4),
        "sim_dense": (2 * nhid4, nhid4),
        "ensemble1": (3 * nhid4, nhid2),
        "ensemble2": (nhid2, nhid3),
        "ensemble3": (nhid3, nhid4),
        "dense1": (nhid4, nclass), "dense2": (nhid4, nclass),
        "dense3": (nhid4, nclass), "densesim": (nhid4, nclass),
        "dense4": (nhid4, nclass),
    }
    keys = jax.random.split(key, 2 * len(specs))
    for idx, (name, (fin, fout)) in enumerate(specs.items()):
        bound = 1.0 / jnp.sqrt(jnp.float32(fout if name.startswith("gc") else fin))
        params[name + "_w"] = _uniform(keys[2 * idx], (fin, fout), bound)
        params[name + "_b"] = _uniform(keys[2 * idx + 1], (1, fout), bound)
    return params


def pack_params(p):
    """Pack per-layer params into lane-dense / block-diagonal kernel tensors."""
    nhid2 = p["gc1_w"].shape[1]
    nhid3 = p["gc2_w"].shape[1]
    nhid4 = p["gc3_w"].shape[1]
    nclass = p["dense1_w"].shape[1]
    nb = 4
    branches = [("gc1", "gc2", "gc3"), ("gc4", "gc5", "gc6"),
                ("gc7", "gc8", "gc9"), ("gc10", "gc11", "gc12")]

    def per_branch_blockdiag(ws, nin, nout):
        mats = []
        for b, w in enumerate(ws):
            m = jnp.zeros((nb * nin, nb * nout), jnp.float32)
            m = m.at[b * nin:(b + 1) * nin, b * nout:(b + 1) * nout].set(w)
            mats.append(m)
        return jnp.stack(mats)

    w1c = jnp.concatenate([p[l1 + "_w"] for (l1, _, _) in branches], axis=1)
    b1c = jnp.concatenate([p[l1 + "_b"] for (l1, _, _) in branches], axis=1)
    w2bd = per_branch_blockdiag([p[l2 + "_w"] for (_, l2, _) in branches], nhid2, nhid3)
    b2c = jnp.concatenate([p[l2 + "_b"] for (_, l2, _) in branches], axis=1)
    w3bd = per_branch_blockdiag([p[l3 + "_w"] for (_, _, l3) in branches], nhid3, nhid4)
    b3c = jnp.concatenate([p[l3 + "_b"] for (_, _, l3) in branches], axis=1)

    # sim_dense(cat(x2, x3)): x2 is slice 1 of xcat, x3 is slice 2.
    wsimp = jnp.zeros((nb * nhid4, nhid4), jnp.float32)
    wsimp = wsimp.at[1 * nhid4:2 * nhid4].set(p["sim_dense_w"][:nhid4])
    wsimp = wsimp.at[2 * nhid4:3 * nhid4].set(p["sim_dense_w"][nhid4:])

    # ensemble1(cat(x1, xsim, x4)): x1 = slice 0, x4 = slice 3, xsim separate.
    we1p = jnp.zeros((nb * nhid4, nhid2), jnp.float32)
    we1p = we1p.at[0:nhid4].set(p["ensemble1_w"][:nhid4])
    we1p = we1p.at[3 * nhid4:4 * nhid4].set(p["ensemble1_w"][2 * nhid4:])
    we1s = p["ensemble1_w"][nhid4:2 * nhid4]

    # Heads: dense1/dense2/dense3/dense3 on relu(x1..x4), densesim on relu(xsim),
    # dense4 on x_ensemble -> one (., 6*nclass) lane-contiguous weight set.
    head_ws = [p["dense1_w"], p["dense2_w"], p["dense3_w"], p["dense3_w"]]
    whdx = jnp.zeros((nb * nhid4, 6 * nclass), jnp.float32)
    for h, w in enumerate(head_ws):
        whdx = whdx.at[h * nhid4:(h + 1) * nhid4, h * nclass:(h + 1) * nclass].set(w)
    whds = jnp.zeros((nhid4, 6 * nclass), jnp.float32)
    whds = whds.at[:, 4 * nclass:5 * nclass].set(p["densesim_w"])
    whde = jnp.zeros((nhid4, 6 * nclass), jnp.float32)
    whde = whde.at[:, 5 * nclass:6 * nclass].set(p["dense4_w"])
    bhd = jnp.concatenate([p["dense1_b"], p["dense2_b"], p["dense3_b"],
                           p["dense3_b"], p["densesim_b"], p["dense4_b"]], axis=1)

    return {"w1c": w1c, "b1c": b1c, "w2bd": w2bd, "b2c": b2c,
            "w3bd": w3bd, "b3c": b3c, "wsimp": wsimp, "bsim": p["sim_dense_b"],
            "we1p": we1p, "we1s": we1s, "be1": p["ensemble1_b"],
            "we2": p["ensemble2_w"], "be2": p["ensemble2_b"],
            "we3": p["ensemble3_w"], "be3": p["ensemble3_b"],
            "whdx": whdx, "whds": whds, "whde": whde, "bhd": bhd}


# ---------------------------------------------------------------------------
# Pure-JAX reference (mirrors the PyTorch forward exactly, eval mode)
# ---------------------------------------------------------------------------
def reference_forward(p, x, adj1, adj2, adj3, adj4, adj5):
    del adj2
    mm = lambda a, b: jnp.dot(a, b, precision=jax.lax.Precision.HIGHEST)
    relu = lambda v: jnp.maximum(v, 0.0)

    def gcn(h, adj, name, act):
        out = mm(adj, mm(h, p[name + "_w"])) + p[name + "_b"]
        return relu(out) if act else out

    def dense(h, name):
        return mm(h, p[name + "_w"]) + p[name + "_b"]

    x1 = gcn(x, adj5, "gc1", True)
    x1 = gcn(x1, adj5, "gc2", True)
    x1 = gcn(x1, adj5, "gc3", False)
    x1_dense = dense(relu(x1), "dense1")

    x2 = gcn(x, adj4, "gc4", True)
    x2 = gcn(x2, adj4, "gc5", True)
    x2 = gcn(x2, adj4, "gc6", False)
    x2_dense = dense(relu(x2), "dense2")

    x3 = gcn(x, adj3, "gc7", True)
    x3 = gcn(x3, adj3, "gc8", True)
    x3 = gcn(x3, adj3, "gc9", False)
    x3_dense = dense(relu(x3), "dense3")

    xsim = dense(jnp.concatenate([x2, x3], axis=1), "sim_dense")
    xsim_dense = dense(relu(xsim), "densesim")

    x4 = gcn(x, adj1, "gc10", True)
    x4 = gcn(x4, adj1, "gc11", True)
    x4 = gcn(x4, adj1, "gc12", False)
    x4_dense = dense(relu(x4), "dense3")          # dense3 reused, as in PyTorch

    xe = relu(dense(jnp.concatenate([x1, xsim, x4], axis=1), "ensemble1"))
    xe = relu(dense(xe, "ensemble2"))
    xe = relu(dense(xe, "ensemble3"))
    x_ensemble = dense(xe, "dense4")

    return x1_dense, x2_dense, x3_dense, x4_dense, xsim_dense, x_ensemble


# ---------------------------------------------------------------------------
# Demo
# ---------------------------------------------------------------------------
if __name__ == "__main__":
    N = 8
    nFeat = 16
    nhid2, nhid3, nhid4 = 32, 16, 8
    nclass = 2

    key = jax.random.PRNGKey(0)
    kp, kx, *kadj = jax.random.split(key, 8)

    params = init_params(kp, nFeat, nhid2, nhid3, nhid4, nclass)
    packed = pack_params(params)
    x = jax.random.normal(kx, (N, nFeat), jnp.float32)

    def make_adj(k):
        a = jax.random.uniform(k, (N, N), jnp.float32)
        a = (a + a.T) * 0.5 + jnp.eye(N, dtype=jnp.float32)
        return a / jnp.sum(a, axis=1, keepdims=True)   # row-normalized

    adj1, adj2, adj3, adj4, adj5 = (make_adj(k) for k in kadj[:5])

    fwd = jax.jit(gcn_decay_rep2_forward)
    outs = fwd(packed, x, adj1, adj2, adj3, adj4, adj5)
    outs = jax.block_until_ready(outs)

    # correctness check against the pure-JAX f32 reference (kernel uses bf16
    # adjacency matmul operands with f32 accumulation -> slightly looser tol)
    ref_outs = jax.jit(reference_forward)(params, x, adj1, adj2, adj3, adj4, adj5)
    ref_outs = jax.block_until_ready(ref_outs)

    expected_shapes = [(N, nclass)] * 6
    assert [tuple(o.shape) for o in outs] == expected_shapes, \
        [tuple(o.shape) for o in outs]
    for got, want in zip(outs, ref_outs):
        assert bool(jnp.all(jnp.isfinite(got)))
        assert bool(jnp.allclose(got, want, atol=2e-2, rtol=2e-2)), \
            float(jnp.max(jnp.abs(got - want)))

    print("KERNEL_OK")
</pallas_src>

<mosaic_0001>
module attributes {stable_mosaic.version = 11 : i64} {
  func.func @_fused_forward_kernel(%arg0: memref<8x16xf32, #tpu.memory_space<vmem>>, %arg1: memref<8x8xbf16, #tpu.memory_space<vmem>>, %arg2: memref<8x8xbf16, #tpu.memory_space<vmem>>, %arg3: memref<8x8xbf16, #tpu.memory_space<vmem>>, %arg4: memref<8x8xbf16, #tpu.memory_space<vmem>>, %arg5: memref<16x128xf32, #tpu.memory_space<vmem>>, %arg6: memref<1x128xf32, #tpu.memory_space<vmem>>, %arg7: memref<4x128x64xf32, #tpu.memory_space<vmem>>, %arg8: memref<1x64xf32, #tpu.memory_space<vmem>>, %arg9: memref<4x64x32xf32, #tpu.memory_space<vmem>>, %arg10: memref<1x32xf32, #tpu.memory_space<vmem>>, %arg11: memref<32x8xf32, #tpu.memory_space<vmem>>, %arg12: memref<1x8xf32, #tpu.memory_space<vmem>>, %arg13: memref<32x32xf32, #tpu.memory_space<vmem>>, %arg14: memref<8x32xf32, #tpu.memory_space<vmem>>, %arg15: memref<1x32xf32, #tpu.memory_space<vmem>>, %arg16: memref<32x16xf32, #tpu.memory_space<vmem>>, %arg17: memref<1x16xf32, #tpu.memory_space<vmem>>, %arg18: memref<16x8xf32, #tpu.memory_space<vmem>>, %arg19: memref<1x8xf32, #tpu.memory_space<vmem>>, %arg20: memref<32x12xf32, #tpu.memory_space<vmem>>, %arg21: memref<8x12xf32, #tpu.memory_space<vmem>>, %arg22: memref<8x12xf32, #tpu.memory_space<vmem>>, %arg23: memref<1x12xf32, #tpu.memory_space<vmem>>, %arg24: memref<8x12xf32, #tpu.memory_space<vmem>>) attributes {dimension_semantics = [], scalar_prefetch = 0 : i64, scratch_operands = 0 : i64, tpu.core_type = #tpu.core_type<tc>} {
    %c0 = arith.constant 0 : index
    %c0_0 = arith.constant 0 : index
    %0 = vector.load %arg0[%c0, %c0_0] : memref<8x16xf32, #tpu.memory_space<vmem>>, vector<8x16xf32>
    %c0_1 = arith.constant 0 : index
    %c0_2 = arith.constant 0 : index
    %1 = vector.load %arg5[%c0_1, %c0_2] : memref<16x128xf32, #tpu.memory_space<vmem>>, vector<16x128xf32>
    %cst = arith.constant dense<0.000000e+00> : vector<8x128xf32>
    %2 = tpu.matmul %0, %1, %cst {dimension_numbers = #tpu.dot_dimension_numbers<[1], [0], [0], [1], [0, 0, 1, 1], [], []>} : vector<8x16xf32>, vector<16x128xf32>, vector<8x128xf32> -> vector<8x128xf32>
    %3 = arith.truncf %2 : vector<8x128xf32> to vector<8x128xbf16>
    %c0_3 = arith.constant 0 : index
    %c0_4 = arith.constant 0 : index
    %4 = vector.load %arg6[%c0_3, %c0_4] : memref<1x128xf32, #tpu.memory_space<vmem>>, vector<1x128xf32>
    %c0_5 = arith.constant 0 : index
    %c0_6 = arith.constant 0 : index
    %5 = vector.load %arg8[%c0_5, %c0_6] : memref<1x64xf32, #tpu.memory_space<vmem>>, vector<1x64xf32>
    %cst_7 = arith.constant 0.000000e+00 : f32
    %6 = vector.broadcast %cst_7 : f32 to vector<8x32xf32>
    %c0_8 = arith.constant 0 : index
    %c0_9 = arith.constant 0 : index
    %7 = vector.load %arg1[%c0_8, %c0_9] : memref<8x8xbf16, #tpu.memory_space<vmem>>, vector<8x8xbf16>
    %cst_10 = arith.constant dense<0.000000e+00> : vector<8x128xf32>
    %8 = tpu.matmul %7, %3, %cst_10 {dimension_numbers = #tpu.dot_dimension_numbers<[1], [0], [0], [1], [0, 0, 1, 1], [], []>} : vector<8x8xbf16>, vector<8x128xbf16>, vector<8x128xf32> -> vector<8x128xf32>
    %9 = vector.broadcast %4 : vector<1x128xf32> to vector<8x128xf32>
    %10 = arith.addf %8, %9 : vector<8x128xf32>
    %cst_11 = arith.constant 0.000000e+00 : f32
    %11 = vector.broadcast %cst_11 : f32 to vector<8x128xf32>
    %12 = arith.maximumf %10, %11 : vector<8x128xf32>
    %c0_12 = arith.constant 0 : index
    %c0_13 = arith.constant 0 : index
    %c0_14 = arith.constant 0 : index
    %13 = vector.load %arg7[%c0_12, %c0_13, %c0_14] : memref<4x128x64xf32, #tpu.memory_space<vmem>>, vector<1x128x64xf32>
    %14 = vector.shape_cast %13 : vector<1x128x64xf32> to vector<128x64xf32>
    %cst_15 = arith.constant dense<0.000000e+00> : vector<8x64xf32>
    %15 = tpu.matmul %12, %14, %cst_15 {dimension_numbers = #tpu.dot_dimension_numbers<[1], [0], [0], [1], [0, 0, 1, 1], [], []>} : vector<8x128xf32>, vector<128x64xf32>, vector<8x64xf32> -> vector<8x64xf32>
    %16 = arith.truncf %15 : vector<8x64xf32> to vector<8x64xbf16>
    %cst_16 = arith.constant dense<0.000000e+00> : vector<8x64xf32>
    %17 = tpu.matmul %7, %16, %cst_16 {dimension_numbers = #tpu.dot_dimension_numbers<[1], [0], [0], [1], [0, 0, 1, 1], [], []>} : vector<8x8xbf16>, vector<8x64xbf16>, vector<8x64xf32> -> vector<8x64xf32>
    %18 = vector.broadcast %5 : vector<1x64xf32> to vector<8x64xf32>
    %19 = arith.addf %17, %18 : vector<8x64xf32>
    %cst_17 = arith.constant 0.000000e+00 : f32
    %20 = vector.broadcast %cst_17 : f32 to vector<8x64xf32>
    %21 = arith.maximumf %19, %20 : vector<8x64xf32>
    %c0_18 = arith.constant 0 : index
    %c0_19 = arith.constant 0 : index
    %c0_20 = arith.constant 0 : index
    %22 = vector.load %arg9[%c0_18, %c0_19, %c0_20] : memref<4x64x32xf32, #tpu.memory_space<vmem>>, vector<1x64x32xf32>
    %23 = vector.shape_cast %22 : vector<1x64x32xf32> to vector<64x32xf32>
    %cst_21 = arith.constant dense<0.000000e+00> : vector<8x32xf32>
    %24 = tpu.matmul %21, %23, %cst_21 {dimension_numbers = #tpu.dot_dimension_numbers<[1], [0], [0], [1], [0, 0, 1, 1], [], []>} : vector<8x64xf32>, vector<64x32xf32>, vector<8x32xf32> -> vector<8x32xf32>
    %25 = arith.truncf %24 : vector<8x32xf32> to vector<8x32xbf16>
    %cst_22 = arith.constant dense<0.000000e+00> : vector<8x32xf32>
    %26 = tpu.matmul %7, %25, %cst_22 {dimension_numbers = #tpu.dot_dimension_numbers<[1], [0], [0], [1], [0, 0, 1, 1], [], []>} : vector<8x8xbf16>, vector<8x32xbf16>, vector<8x32xf32> -> vector<8x32xf32>
    %27 = arith.addf %6, %26 : vector<8x32xf32>
    %c0_23 = arith.constant 0 : index
    %c0_24 = arith.constant 0 : index
    %28 = vector.load %arg2[%c0_23, %c0_24] : memref<8x8xbf16, #tpu.memory_space<vmem>>, vector<8x8xbf16>
    %cst_25 = arith.constant dense<0.000000e+00> : vector<8x128xf32>
    %29 = tpu.matmul %28, %3, %cst_25 {dimension_numbers = #tpu.dot_dimension_numbers<[1], [0], [0], [1], [0, 0, 1, 1], [], []>} : vector<8x8xbf16>, vector<8x128xbf16>, vector<8x128xf32> -> vector<8x128xf32>
    %30 = vector.broadcast %4 : vector<1x128xf32> to vector<8x128xf32>
    %31 = arith.addf %29, %30 : vector<8x128xf32>
    %cst_26 = arith.constant 0.000000e+00 : f32
    %32 = vector.broadcast %cst_26 : f32 to vector<8x128xf32>
    %33 = arith.maximumf %31, %32 : vector<8x128xf32>
    %c1 = arith.constant 1 : index
    %c0_27 = arith.constant 0 : index
    %c0_28 = arith.constant 0 : index
    %34 = vector.load %arg7[%c1, %c0_27, %c0_28] : memref<4x128x64xf32, #tpu.memory_space<vmem>>, vector<1x128x64xf32>
    %35 = vector.shape_cast %34 : vector<1x128x64xf32> to vector<128x64xf32>
    %cst_29 = arith.constant dense<0.000000e+00> : vector<8x64xf32>
    %36 = tpu.matmul %33, %35, %cst_29 {dimension_numbers = #tpu.dot_dimension_numbers<[1], [0], [0], [1], [0, 0, 1, 1], [], []>} : vector<8x128xf32>, vector<128x64xf32>, vector<8x64xf32> -> vector<8x64xf32>
    %37 = arith.truncf %36 : vector<8x64xf32> to vector<8x64xbf16>
    %cst_30 = arith.constant dense<0.000000e+00> : vector<8x64xf32>
    %38 = tpu.matmul %28, %37, %cst_30 {dimension_numbers = #tpu.dot_dimension_numbers<[1], [0], [0], [1], [0, 0, 1, 1], [], []>} : vector<8x8xbf16>, vector<8x64xbf16>, vector<8x64xf32> -> vector<8x64xf32>
    %39 = vector.broadcast %5 : vector<1x64xf32> to vector<8x64xf32>
    %40 = arith.addf %38, %39 : vector<8x64xf32>
    %cst_31 = arith.constant 0.000000e+00 : f32
    %41 = vector.broadcast %cst_31 : f32 to vector<8x64xf32>
    %42 = arith.maximumf %40, %41 : vector<8x64xf32>
    %c1_32 = arith.constant 1 : index
    %c0_33 = arith.constant 0 : index
    %c0_34 = arith.constant 0 : index
    %43 = vector.load %arg9[%c1_32, %c0_33, %c0_34] : memref<4x64x32xf32, #tpu.memory_space<vmem>>, vector<1x64x32xf32>
    %44 = vector.shape_cast %43 : vector<1x64x32xf32> to vector<64x32xf32>
    %cst_35 = arith.constant dense<0.000000e+00> : vector<8x32xf32>
    %45 = tpu.matmul %42, %44, %cst_35 {dimension_numbers = #tpu.dot_dimension_numbers<[1], [0], [0], [1], [0, 0, 1, 1], [], []>} : vector<8x64xf32>, vector<64x32xf32>, vector<8x32xf32> -> vector<8x32xf32>
    %46 = arith.truncf %45 : vector<8x32xf32> to vector<8x32xbf16>
    %cst_36 = arith.constant dense<0.000000e+00> : vector<8x32xf32>
    %47 = tpu.matmul %28, %46, %cst_36 {dimension_numbers = #tpu.dot_dimension_numbers<[1], [0], [0], [1], [0, 0, 1, 1], [], []>} : vector<8x8xbf16>, vector<8x32xbf16>, vector<8x32xf32> -> vector<8x32xf32>
    %48 = arith.addf %27, %47 : vector<8x32xf32>
    %c0_37 = arith.constant 0 : index
    %c0_38 = arith.constant 0 : index
    %49 = vector.load %arg3[%c0_37, %c0_38] : memref<8x8xbf16, #tpu.memory_space<vmem>>, vector<8x8xbf16>
    %cst_39 = arith.constant dense<0.000000e+00> : vector<8x128xf32>
    %50 = tpu.matmul %49, %3, %cst_39 {dimension_numbers = #tpu.dot_dimension_numbers<[1], [0], [0], [1], [0, 0, 1, 1], [], []>} : vector<8x8xbf16>, vector<8x128xbf16>, vector<8x128xf32> -> vector<8x128xf32>
    %51 = vector.broadcast %4 : vector<1x128xf32> to vector<8x128xf32>
    %52 = arith.addf %50, %51 : vector<8x128xf32>
    %cst_40 = arith.constant 0.000000e+00 : f32
    %53 = vector.broadcast %cst_40 : f32 to vector<8x128xf32>
    %54 = arith.maximumf %52, %53 : vector<8x128xf32>
    %c2 = arith.constant 2 : index
    %c0_41 = arith.constant 0 : index
    %c0_42 = arith.constant 0 : index
    %55 = vector.load %arg7[%c2, %c0_41, %c0_42] : memref<4x128x64xf32, #tpu.memory_space<vmem>>, vector<1x128x64xf32>
    %56 = vector.shape_cast %55 : vector<1x128x64xf32> to vector<128x64xf32>
    %cst_43 = arith.constant dense<0.000000e+00> : vector<8x64xf32>
    %57 = tpu.matmul %54, %56, %cst_43 {dimension_numbers = #tpu.dot_dimension_numbers<[1], [0], [0], [1], [0, 0, 1, 1], [], []>} : vector<8x128xf32>, vector<128x64xf32>, vector<8x64xf32> -> vector<8x64xf32>
    %58 = arith.truncf %57 : vector<8x64xf32> to vector<8x64xbf16>
    %cst_44 = arith.constant dense<0.000000e+00> : vector<8x64xf32>
    %59 = tpu.matmul %49, %58, %cst_44 {dimension_numbers = #tpu.dot_dimension_numbers<[1], [0], [0], [1], [0, 0, 1, 1], [], []>} : vector<8x8xbf16>, vector<8x64xbf16>, vector<8x64xf32> -> vector<8x64xf32>
    %60 = vector.broadcast %5 : vector<1x64xf32> to vector<8x64xf32>
    %61 = arith.addf %59, %60 : vector<8x64xf32>
    %cst_45 = arith.constant 0.000000e+00 : f32
    %62 = vector.broadcast %cst_45 : f32 to vector<8x64xf32>
    %63 = arith.maximumf %61, %62 : vector<8x64xf32>
    %c2_46 = arith.constant 2 : index
    %c0_47 = arith.constant 0 : index
    %c0_48 = arith.constant 0 : index
    %64 = vector.load %arg9[%c2_46, %c0_47, %c0_48] : memref<4x64x32xf32, #tpu.memory_space<vmem>>, vector<1x64x32xf32>
    %65 = vector.shape_cast %64 : vector<1x64x32xf32> to vector<64x32xf32>
    %cst_49 = arith.constant dense<0.000000e+00> : vector<8x32xf32>
    %66 = tpu.matmul %63, %65, %cst_49 {dimension_numbers = #tpu.dot_dimension_numbers<[1], [0], [0], [1], [0, 0, 1, 1], [], []>} : vector<8x64xf32>, vector<64x32xf32>, vector<8x32xf32> -> vector<8x32xf32>
    %67 = arith.truncf %66 : vector<8x32xf32> to vector<8x32xbf16>
    %cst_50 = arith.constant dense<0.000000e+00> : vector<8x32xf32>
    %68 = tpu.matmul %49, %67, %cst_50 {dimension_numbers = #tpu.dot_dimension_numbers<[1], [0], [0], [1], [0, 0, 1, 1], [], []>} : vector<8x8xbf16>, vector<8x32xbf16>, vector<8x32xf32> -> vector<8x32xf32>
    %69 = arith.addf %48, %68 : vector<8x32xf32>
    %c0_51 = arith.constant 0 : index
    %c0_52 = arith.constant 0 : index
    %70 = vector.load %arg4[%c0_51, %c0_52] : memref<8x8xbf16, #tpu.memory_space<vmem>>, vector<8x8xbf16>
    %cst_53 = arith.constant dense<0.000000e+00> : vector<8x128xf32>
    %71 = tpu.matmul %70, %3, %cst_53 {dimension_numbers = #tpu.dot_dimension_numbers<[1], [0], [0], [1], [0, 0, 1, 1], [], []>} : vector<8x8xbf16>, vector<8x128xbf16>, vector<8x128xf32> -> vector<8x128xf32>
    %72 = vector.broadcast %4 : vector<1x128xf32> to vector<8x128xf32>
    %73 = arith.addf %71, %72 : vector<8x128xf32>
    %cst_54 = arith.constant 0.000000e+00 : f32
    %74 = vector.broadcast %cst_54 : f32 to vector<8x128xf32>
    %75 = arith.maximumf %73, %74 : vector<8x128xf32>
    %c3 = arith.constant 3 : index
    %c0_55 = arith.constant 0 : index
    %c0_56 = arith.constant 0 : index
    %76 = vector.load %arg7[%c3, %c0_55, %c0_56] : memref<4x128x64xf32, #tpu.memory_space<vmem>>, vector<1x128x64xf32>
    %77 = vector.shape_cast %76 : vector<1x128x64xf32> to vector<128x64xf32>
    %cst_57 = arith.constant dense<0.000000e+00> : vector<8x64xf32>
    %78 = tpu.matmul %75, %77, %cst_57 {dimension_numbers = #tpu.dot_dimension_numbers<[1], [0], [0], [1], [0, 0, 1, 1], [], []>} : vector<8x128xf32>, vector<128x64xf32>, vector<8x64xf32> -> vector<8x64xf32>
    %79 = arith.truncf %78 : vector<8x64xf32> to vector<8x64xbf16>
    %cst_58 = arith.constant dense<0.000000e+00> : vector<8x64xf32>
    %80 = tpu.matmul %70, %79, %cst_58 {dimension_numbers = #tpu.dot_dimension_numbers<[1], [0], [0], [1], [0, 0, 1, 1], [], []>} : vector<8x8xbf16>, vector<8x64xbf16>, vector<8x64xf32> -> vector<8x64xf32>
    %81 = vector.broadcast %5 : vector<1x64xf32> to vector<8x64xf32>
    %82 = arith.addf %80, %81 : vector<8x64xf32>
    %cst_59 = arith.constant 0.000000e+00 : f32
    %83 = vector.broadcast %cst_59 : f32 to vector<8x64xf32>
    %84 = arith.maximumf %82, %83 : vector<8x64xf32>
    %c3_60 = arith.constant 3 : index
    %c0_61 = arith.constant 0 : index
    %c0_62 = arith.constant 0 : index
    %85 = vector.load %arg9[%c3_60, %c0_61, %c0_62] : memref<4x64x32xf32, #tpu.memory_space<vmem>>, vector<1x64x32xf32>
    %86 = vector.shape_cast %85 : vector<1x64x32xf32> to vector<64x32xf32>
    %cst_63 = arith.constant dense<0.000000e+00> : vector<8x32xf32>
    %87 = tpu.matmul %84, %86, %cst_63 {dimension_numbers = #tpu.dot_dimension_numbers<[1], [0], [0], [1], [0, 0, 1, 1], [], []>} : vector<8x64xf32>, vector<64x32xf32>, vector<8x32xf32> -> vector<8x32xf32>
    %88 = arith.truncf %87 : vector<8x32xf32> to vector<8x32xbf16>
    %cst_64 = arith.constant dense<0.000000e+00> : vector<8x32xf32>
    %89 = tpu.matmul %70, %88, %cst_64 {dimension_numbers = #tpu.dot_dimension_numbers<[1], [0], [0], [1], [0, 0, 1, 1], [], []>} : vector<8x8xbf16>, vector<8x32xbf16>, vector<8x32xf32> -> vector<8x32xf32>
    %90 = arith.addf %69, %89 : vector<8x32xf32>
    %c0_65 = arith.constant 0 : index
    %c0_66 = arith.constant 0 : index
    %91 = vector.load %arg10[%c0_65, %c0_66] : memref<1x32xf32, #tpu.memory_space<vmem>>, vector<1x32xf32>
    %92 = vector.broadcast %91 : vector<1x32xf32> to vector<8x32xf32>
    %93 = arith.addf %90, %92 : vector<8x32xf32>
    %c0_67 = arith.constant 0 : index
    %c0_68 = arith.constant 0 : index
    %94 = vector.load %arg11[%c0_67, %c0_68] : memref<32x8xf32, #tpu.memory_space<vmem>>, vector<32x8xf32>
    %cst_69 = arith.constant dense<0.000000e+00> : vector<8x8xf32>
    %95 = tpu.matmul %93, %94, %cst_69 {dimension_numbers = #tpu.dot_dimension_numbers<[1], [0], [0], [1], [0, 0, 1, 1], [], []>} : vector<8x32xf32>, vector<32x8xf32>, vector<8x8xf32> -> vector<8x8xf32>
    %c0_70 = arith.constant 0 : index
    %c0_71 = arith.constant 0 : index
    %96 = vector.load %arg12[%c0_70, %c0_71] : memref<1x8xf32, #tpu.memory_space<vmem>>, vector<1x8xf32>
    %97 = vector.broadcast %96 : vector<1x8xf32> to vector<8x8xf32>
    %98 = arith.addf %95, %97 : vector<8x8xf32>
    %c0_72 = arith.constant 0 : index
    %c0_73 = arith.constant 0 : index
    %99 = vector.load %arg13[%c0_72, %c0_73] : memref<32x32xf32, #tpu.memory_space<vmem>>, vector<32x32xf32>
    %cst_74 = arith.constant dense<0.000000e+00> : vector<8x32xf32>
    %100 = tpu.matmul %93, %99, %cst_74 {dimension_numbers = #tpu.dot_dimension_numbers<[1], [0], [0], [1], [0, 0, 1, 1], [], []>} : vector<8x32xf32>, vector<32x32xf32>, vector<8x32xf32> -> vector<8x32xf32>
    %c0_75 = arith.constant 0 : index
    %c0_76 = arith.constant 0 : index
    %101 = vector.load %arg14[%c0_75, %c0_76] : memref<8x32xf32, #tpu.memory_space<vmem>>, vector<8x32xf32>
    %cst_77 = arith.constant dense<0.000000e+00> : vector<8x32xf32>
    %102 = tpu.matmul %98, %101, %cst_77 {dimension_numbers = #tpu.dot_dimension_numbers<[1], [0], [0], [1], [0, 0, 1, 1], [], []>} : vector<8x8xf32>, vector<8x32xf32>, vector<8x32xf32> -> vector<8x32xf32>
    %103 = arith.addf %100, %102 : vector<8x32xf32>
    %c0_78 = arith.constant 0 : index
    %c0_79 = arith.constant 0 : index
    %104 = vector.load %arg15[%c0_78, %c0_79] : memref<1x32xf32, #tpu.memory_space<vmem>>, vector<1x32xf32>
    %105 = vector.broadcast %104 : vector<1x32xf32> to vector<8x32xf32>
    %106 = arith.addf %103, %105 : vector<8x32xf32>
    %cst_80 = arith.constant 0.000000e+00 : f32
    %107 = vector.broadcast %cst_80 : f32 to vector<8x32xf32>
    %108 = arith.maximumf %106, %107 : vector<8x32xf32>
    %c0_81 = arith.constant 0 : index
    %c0_82 = arith.constant 0 : index
    %109 = vector.load %arg16[%c0_81, %c0_82] : memref<32x16xf32, #tpu.memory_space<vmem>>, vector<32x16xf32>
    %cst_83 = arith.constant dense<0.000000e+00> : vector<8x16xf32>
    %110 = tpu.matmul %108, %109, %cst_83 {dimension_numbers = #tpu.dot_dimension_numbers<[1], [0], [0], [1], [0, 0, 1, 1], [], []>} : vector<8x32xf32>, vector<32x16xf32>, vector<8x16xf32> -> vector<8x16xf32>
    %c0_84 = arith.constant 0 : index
    %c0_85 = arith.constant 0 : index
    %111 = vector.load %arg17[%c0_84, %c0_85] : memref<1x16xf32, #tpu.memory_space<vmem>>, vector<1x16xf32>
    %112 = vector.broadcast %111 : vector<1x16xf32> to vector<8x16xf32>
    %113 = arith.addf %110, %112 : vector<8x16xf32>
    %cst_86 = arith.constant 0.000000e+00 : f32
    %114 = vector.broadcast %cst_86 : f32 to vector<8x16xf32>
    %115 = arith.maximumf %113, %114 : vector<8x16xf32>
    %c0_87 = arith.constant 0 : index
    %c0_88 = arith.constant 0 : index
    %116 = vector.load %arg18[%c0_87, %c0_88] : memref<16x8xf32, #tpu.memory_space<vmem>>, vector<16x8xf32>
    %cst_89 = arith.constant dense<0.000000e+00> : vector<8x8xf32>
    %117 = tpu.matmul %115, %116, %cst_89 {dimension_numbers = #tpu.dot_dimension_numbers<[1], [0], [0], [1], [0, 0, 1, 1], [], []>} : vector<8x16xf32>, vector<16x8xf32>, vector<8x8xf32> -> vector<8x8xf32>
    %c0_90 = arith.constant 0 : index
    %c0_91 = arith.constant 0 : index
    %118 = vector.load %arg19[%c0_90, %c0_91] : memref<1x8xf32, #tpu.memory_space<vmem>>, vector<1x8xf32>
    %119 = vector.broadcast %118 : vector<1x8xf32> to vector<8x8xf32>
    %120 = arith.addf %117, %119 : vector<8x8xf32>
    %cst_92 = arith.constant 0.000000e+00 : f32
    %121 = vector.broadcast %cst_92 : f32 to vector<8x8xf32>
    %122 = arith.maximumf %120, %121 : vector<8x8xf32>
    %cst_93 = arith.constant 0.000000e+00 : f32
    %123 = vector.broadcast %cst_93 : f32 to vector<8x32xf32>
    %124 = arith.maximumf %93, %123 : vector<8x32xf32>
    %c0_94 = arith.constant 0 : index
    %c0_95 = arith.constant 0 : index
    %125 = vector.load %arg20[%c0_94, %c0_95] : memref<32x12xf32, #tpu.memory_space<vmem>>, vector<32x12xf32>
    %cst_96 = arith.constant dense<0.000000e+00> : vector<8x12xf32>
    %126 = tpu.matmul %124, %125, %cst_96 {dimension_numbers = #tpu.dot_dimension_numbers<[1], [0], [0], [1], [0, 0, 1, 1], [], []>} : vector<8x32xf32>, vector<32x12xf32>, vector<8x12xf32> -> vector<8x12xf32>
    %cst_97 = arith.constant 0.000000e+00 : f32
    %127 = vector.broadcast %cst_97 : f32 to vector<8x8xf32>
    %128 = arith.maximumf %98, %127 : vector<8x8xf32>
    %c0_98 = arith.constant 0 : index
    %c0_99 = arith.constant 0 : index
    %129 = vector.load %arg21[%c0_98, %c0_99] : memref<8x12xf32, #tpu.memory_space<vmem>>, vector<8x12xf32>
    %cst_100 = arith.constant dense<0.000000e+00> : vector<8x12xf32>
    %130 = tpu.matmul %128, %129, %cst_100 {dimension_numbers = #tpu.dot_dimension_numbers<[1], [0], [0], [1], [0, 0, 1, 1], [], []>} : vector<8x8xf32>, vector<8x12xf32>, vector<8x12xf32> -> vector<8x12xf32>
    %131 = arith.addf %126, %130 : vector<8x12xf32>
    %c0_101 = arith.constant 0 : index
    %c0_102 = arith.constant 0 : index
    %132 = vector.load %arg22[%c0_101, %c0_102] : memref<8x12xf32, #tpu.memory_space<vmem>>, vector<8x12xf32>
    %cst_103 = arith.constant dense<0.000000e+00> : vector<8x12xf32>
    %133 = tpu.matmul %122, %132, %cst_103 {dimension_numbers = #tpu.dot_dimension_numbers<[1], [0], [0], [1], [0, 0, 1, 1], [], []>} : vector<8x8xf32>, vector<8x12xf32>, vector<8x12xf32> -> vector<8x12xf32>
    %134 = arith.addf %131, %133 : vector<8x12xf32>
    %c0_104 = arith.constant 0 : index
    %c0_105 = arith.constant 0 : index
    %135 = vector.load %arg23[%c0_104, %c0_105] : memref<1x12xf32, #tpu.memory_space<vmem>>, vector<1x12xf32>
    %136 = vector.broadcast %135 : vector<1x12xf32> to vector<8x12xf32>
    %137 = arith.addf %134, %136 : vector<8x12xf32>
    %c0_106 = arith.constant 0 : index
    %c0_107 = arith.constant 0 : index
    %138 = vector.load %arg24[%c0_106, %c0_107] : memref<8x12xf32, #tpu.memory_space<vmem>>, vector<8x12xf32>
    tpu.vector_store %arg24[%c0_106, %c0_107], %137 {strides = array<i32>} : memref<8x12xf32, #tpu.memory_space<vmem>>, vector<8x12xf32>,
    return
  }
}

</mosaic_0001>

<bundles_post_ra>
// kernel: gcn_decay_rep2_forward.1
= control target key start
LH: loop header
LB: loop body
LE: loop exit
PB: predicated region body
PF: predicated region fallthrough
CT: control target
= control target key end

     0   :  { %v2676_v0 = vmov 0.0   ;;  %vm2677_vm0 = vmmov 0   ;;  %vm81_vm1 = vcmask 130048   ;;  %vm169_vm2 = vcmask 1043456   ;;  %s3478_s5 = inlined_call_operand.vmem [shape: f32[16,128], index: 5, kind: input, shape index: {}]   ;;  %s3479_s0 = inlined_call_operand.vmem [shape: f32[8,16], index: 0, kind: input, shape index: {}]   ;;  %s3480_s7 = inlined_call_operand.vmem [shape: f32[4,128,64], index: 7, kind: input, shape index: {}]   ;;  %s3481_s1 = inlined_call_operand.vmem [shape: bf16[8,8], index: 1, kind: input, shape index: {}]   ;;  %s3482_s6 = inlined_call_operand.vmem [shape: f32[1,128], index: 6, kind: input, shape index: {}]   ;;  %s3483_s9 = inlined_call_operand.vmem [shape: f32[4,64,32], index: 9, kind: input, shape index: {}]   ;;  %s3484_s8 = inlined_call_operand.vmem [shape: f32[1,64], index: 8, kind: input, shape index: {}]   ;;  %s3485_s2 = inlined_call_operand.vmem [shape: bf16[8,8], index: 2, kind: input, shape index: {}]   ;;  %s3486_s3 = inlined_call_operand.vmem [shape: bf16[8,8], index: 3, kind: input, shape index: {}]   ;;  %s3487_s4 = inlined_call_operand.vmem [shape: bf16[8,8], index: 4, kind: input, shape index: {}]   ;;  %s3488_s11 = inlined_call_operand.vmem [shape: f32[32,8], index: 11, kind: input, shape index: {}]   ;;  %s3489_s10 = inlined_call_operand.vmem [shape: f32[1,32], index: 10, kind: input, shape index: {}]   ;;  %s3490_s13 = inlined_call_operand.vmem [shape: f32[32,32], index: 13, kind: input, shape index: {}]   ;;  %s3491_s14 = inlined_call_operand.vmem [shape: f32[8,32], index: 14, kind: input, shape index: {}]   ;;  %s3492_s12 = inlined_call_operand.vmem [shape: f32[1,8], index: 12, kind: input, shape index: {}]   ;;  %s3493_s16 = inlined_call_operand.vmem [shape: f32[32,16], index: 16, kind: input, shape index: {}]   ;;  %s3494_s15 = inlined_call_operand.vmem [shape: f32[1,32], index: 15, kind: input, shape index: {}]   ;;  %s3495_s21 = inlined_call_operand.vmem [shape: f32[8,12], index: 21, kind: input, shape index: {}]   ;;  %s3496_s18 = inlined_call_operand.vmem [shape: f32[16,8], index: 18, kind: input, shape index: {}]   ;;  %s3497_s17 = inlined_call_operand.vmem [shape: f32[1,16], index: 17, kind: input, shape index: {}]   ;;  %s3498_s20 = inlined_call_operand.vmem [shape: f32[32,12], index: 20, kind: input, shape index: {}]   ;;  %s3499_s22 = inlined_call_operand.vmem [shape: f32[8,12], index: 22, kind: input, shape index: {}]   ;;  %s3500_s19 = inlined_call_operand.vmem [shape: f32[1,8], index: 19, kind: input, shape index: {}]   ;;  %s3501_s23 = inlined_call_operand.vmem [shape: f32[1,12], index: 23, kind: input, shape index: {}]   ;;  %s3502_s24 = inlined_call_operand.vmem [shape: f32[8,12], index: 24, kind: output, shape index: {}]  }
   0x1   :  { %3506 = sst [smem:[#allocation2_spill]] %s3478_s5  ;;  %2313 = vmatprep.subr.mxu0 %v2676_v0  ;;  %2317 = vmatprep.mubr.msk.f32.mxu0 %vm2677_vm0, %v2676_v0  ;;  %vm165_vm3 = vcmask 64512   ;;  %vm359_vm4 = vcmask 523264   ;;  %vm1407_vm5 = vcmask 261120   ;;  %vm2042_vm6 = vcmask 97280  }
   0x2   :  { %3507 = sst [smem:[#allocation3_spill]] %s3479_s0  ;;  %2320 = vmatprep.subr.bf16.mxu1 %v2676_v0  ;;  %2322 = vmatprep.mubr.msk.bf16.mxu1 %vm2677_vm0, %v2676_v0 }
   0x3   :  { %3508 = sst [smem:[#allocation4_spill]] %s3480_s7 }
   0x4   :  { %3509 = sst [smem:[#allocation5_spill]] %s3481_s1 }
   0x5   :  { %3510 = sst [smem:[#allocation6_spill]] %s3482_s6 }
   0x6   :  { %3511 = sst [smem:[#allocation7_spill]] %s3483_s9 }
   0x7   :  { %3512 = sst [smem:[#allocation8_spill]] %s3484_s8 }
   0x8   :  { %3513 = sst [smem:[#allocation9_spill]] %s3485_s2 }
   0x9   :  { %3514 = sst [smem:[#allocation10_spill]] %s3486_s3 }
   0xa   :  { %s3515_s27 = sld [smem:[#allocation2_spill]] }
   0xb   :  { %s3516_s1 = sld [smem:[#allocation3_spill]] }
   0xc   :  { %s3517_s3 = sld [smem:[#allocation4_spill]] }
   0xd   :  { %s3518_s2 = sld [smem:[#allocation5_spill]] }
   0xe   :  { %s3519_s28 = sld [smem:[#allocation6_spill]] }
   0xf   :  { %s3520_s29 = sld [smem:[#allocation7_spill]] }
  0x10   :  { %v80_v1 = vld [vmem:[%s3515_s27 + $0x8] sm:$0xff]  ;;  %v79_v2 = vld [vmem:[%s3515_s27] sm:$0xff]  ;;  %s3521_s5 = sld [smem:[#allocation8_spill]] }
  0x11   :  { %2314 = vmatpush3.msra.mxu0 %v80_v1  ;;  %v78_v3 = vld [vmem:[%s3516_s1] sm:$0xff]  ;;  %s3522_s0 = sld [smem:[#allocation9_spill]] }
  0x12   :  { %2315 = vmatprep.subr.mxu0 %v2676_v0  ;;  %v229_v4 = vld [vmem:[%s3517_s3 + $0x78] sm:$0xff]  ;;  %v228_v5 = vld [vmem:[%s3517_s3 + $0x70] sm:$0xff]  ;;  %v227_v6 = vld [vmem:[%s3517_s3 + $0x68] sm:$0xff]  ;;  %s3523_s6 = sld [smem:[#allocation10_spill]] }
  0x13   :  { %2316 = vmatpush3.msra.mxu0 %v79_v2  ;;  %v226_v7 = vld [vmem:[%s3517_s3 + $0x60] sm:$0xff]  ;;  %v225_v8 = vld [vmem:[%s3517_s3 + $0x58] sm:$0xff]  ;;  %v224_v9 = vld [vmem:[%s3517_s3 + $0x50] sm:$0xff] }
  0x14   :  { %2318 = vmatmul.mubr.msk.f32.vlgmr.msra.gmra.mxu0 %vm81_vm1, %v78_v3  ;;  %2326 = vmatprep.subr.mxu0 %v2676_v0  ;;  %v223_v10 = vld [vmem:[%s3517_s3 + $0x48] sm:$0xff]  ;;  %v222_v11 = vld [vmem:[%s3517_s3 + $0x40] sm:$0xff]  ;;  %v221_v12 = vld [vmem:[%s3517_s3 + $0x38] sm:$0xff] }
  0x15   :  { %2358 = vmatprep.mubr.msk.f32.mxu0 %vm2677_vm0, %v2676_v0  ;;  %2327 = vmatpush3.msra.mxu0 %v229_v4  ;;  %v220_v13 = vld [vmem:[%s3517_s3 + $0x30] sm:$0xff]  ;;  %v219_v14 = vld [vmem:[%s3517_s3 + $0x28] sm:$0xff]  ;;  %v218_v15 = vld [vmem:[%s3517_s3 + $0x20] sm:$0xff] }
  0x16   :  { %2328 = vmatprep.subr.mxu0 %v2676_v0  ;;  %v217_v16 = vld [vmem:[%s3517_s3 + $0x18] sm:$0xff]  ;;  %v2882_v21 = vld [vmem:[%s3518_s2] sm:$0xf]  ;;  %v216_v22 = vld [vmem:[%s3517_s3 + $0x10] sm:$0xff] }
  0x17   :  { %2329 = vmatpush3.msra.mxu0 %v228_v5  ;;  %v215_v23 = vld [vmem:[%s3517_s3 + $0x8] sm:$0xff]  ;;  %v214_v24 = vld [vmem:[%s3517_s3] sm:$0xff]  ;;  %v358_v36 = vld [vmem:[%s3520_s29 + $0x38] sm:$0xff] }
  0x18   :  { %2330 = vmatprep.subr.mxu0 %v2676_v0  ;;  %v2904_v25 = vld [vmem:[%s3519_s28] ss:$0 sm:$0xff]  ;;  %v357_v37 = vld [vmem:[%s3520_s29 + $0x30] sm:$0xff]  ;;  %v356_v38 = vld [vmem:[%s3520_s29 + $0x28] sm:$0xff] }
  0x19   :  { %2331 = vmatpush3.msra.mxu0 %v227_v6  ;;  %v355_v39 = vld [vmem:[%s3520_s29 + $0x20] sm:$0xff]  ;;  %v354_v40 = vld [vmem:[%s3520_s29 + $0x18] sm:$0xff]  ;;  %v353_v41 = vld [vmem:[%s3520_s29 + $0x10] sm:$0xff] }
  0x1a   :  { %2332 = vmatprep.subr.mxu0 %v2676_v0  ;;  %v352_v42 = vld [vmem:[%s3520_s29 + $0x8] sm:$0xff]  ;;  %v351_v43 = vld [vmem:[%s3520_s29] sm:$0xff]  ;;  %v2070_v52 = vld [vmem:[%s3517_s3 + $0xf8] sm:$0xff] }
  0x1b   :  { %2333 = vmatpush3.msra.mxu0 %v226_v7  ;;  %v2950_v44 = vld [vmem:[%s3521_s5] ss:$0 sm:$0xff]  ;;  %v2069_v53 = vld [vmem:[%s3517_s3 + $0xf0] sm:$0xff]  ;;  %v2068_v54 = vld [vmem:[%s3517_s3 + $0xe8] sm:$0xff] }
  0x1c   :  { %2334 = vmatprep.subr.mxu0 %v2676_v0  ;;  %v2960_v51 = vld [vmem:[%s3522_s0] sm:$0xf]  ;;  %v2066_v56 = vld [vmem:[%s3517_s3 + $0xd8] sm:$0xff]  ;;  %v2065_v57 = vld [vmem:[%s3517_s3 + $0xd0] sm:$0xff] }
  0x1d   :  { %2335 = vmatpush3.msra.mxu0 %v225_v8  ;;  %v2067_v55 = vld [vmem:[%s3517_s3 + $0xe0] sm:$0xff]  ;;  %v2064_v58 = vld [vmem:[%s3517_s3 + $0xc8] sm:$0xff]  ;;  %v2062_v60 = vld [vmem:[%s3517_s3 + $0xb8] sm:$0xff] }
  0x1e   :  { %2336 = vmatprep.subr.mxu0 %v2676_v0  ;;  %v2063_v59 = vld [vmem:[%s3517_s3 + $0xc0] sm:$0xff]  ;;  %v2061_v61 = vld [vmem:[%s3517_s3 + $0xb0] sm:$0xff]  ;;  %v2060_v62 = vld [vmem:[%s3517_s3 + $0xa8] sm:$0xff] }
  0x1f   :  { %2337 = vmatpush3.msra.mxu0 %v224_v9  ;;  %v2059_v63 = vld [vmem:[%s3517_s3 + $0xa0] sm:$0xff]  ;;  %v2058_v1 = vld [vmem:[%s3517_s3 + $0x98] sm:$0xff]  ;;  %v2057_v2 = vld [vmem:[%s3517_s3 + $0x90] sm:$0xff] }
  0x20   :  { %2338 = vmatprep.subr.mxu0 %v2676_v0  ;;  %v2056_v3 = vld [vmem:[%s3517_s3 + $0x88] sm:$0xff]  ;;  %v2055_v4 = vld [vmem:[%s3517_s3 + $0x80] sm:$0xff] }
  0x21   :  { %2339 = vmatpush3.msra.mxu0 %v223_v10 }
  0x22   :  { %2340 = vmatprep.subr.mxu0 %v2676_v0 }
  0x23   :  { %2341 = vmatpush3.msra.mxu0 %v222_v11 }
  0x24   :  { %2342 = vmatprep.subr.mxu0 %v2676_v0 }
  0x25   :  { %2343 = vmatpush3.msra.mxu0 %v221_v12 }
  0x26   :  { %2344 = vmatprep.subr.mxu0 %v2676_v0 }
  0x27   :  { %2345 = vmatpush3.msra.mxu0 %v220_v13 }
  0x28   :  { %2346 = vmatprep.subr.mxu0 %v2676_v0 }
  0x29   :  { %2347 = vmatpush3.msra.mxu0 %v219_v14 }
  0x2a   :  { %2348 = vmatprep.subr.mxu0 %v2676_v0 }
  0x2b   :  { %2349 = vmatpush3.msra.mxu0 %v218_v15 }
  0x2c   :  { %2350 = vmatprep.subr.mxu0 %v2676_v0 }
  0x2d   :  { %2351 = vmatpush3.msra.mxu0 %v217_v16 }
  0x2e   :  { %2352 = vmatprep.subr.mxu0 %v2676_v0 }
  0x2f   :  { %2353 = vmatpush3.msra.mxu0 %v216_v22  ;;  %v2076_v22 = vld [vmem:[%s3520_s29 + $0x60] sm:$0xff] }
  0x30   :  { %2354 = vmatprep.subr.mxu0 %v2676_v0 }
  0x31   :  { %2355 = vmatpush3.msra.mxu0 %v215_v23  ;;  %v2075_v23 = vld [vmem:[%s3520_s29 + $0x58] sm:$0xff] }
  0x32   :  { %2356 = vmatprep.subr.mxu0 %v2676_v0 }
  0x33   :  { %2357 = vmatpush3.msra.mxu0 %v214_v24  ;;  %v2074_v24 = vld [vmem:[%s3520_s29 + $0x50] sm:$0xff] }
  0x34   :  { %2427 = vmatprep.subr.bf16.mxu0 %v2676_v0 }
  0xd4   :  { %v151_v17 = vpop.f32.mrf.mxu0 }
  0xd5   :  { %v155_v18 = vpack.c.bf16 %v151_v17, %v151_v17  ;;  %v2079_v17 = vld [vmem:[%s3520_s29 + $0x78] sm:$0xff] }
  0xd6   :  { %v2319_v19 = vpop.f32.mrf.mxu0 }
  0xd7   :  { %v2876_v20 = vsel %vm169_vm2, %v155_v18, 0  ;;  %v2078_v18 = vld [vmem:[%s3520_s29 + $0x70] sm:$0xff]  ;;  %v2077_v19 = vld [vmem:[%s3520_s29 + $0x68] sm:$0xff] }
  0xd8   :  { %2321 = vmatpush3.bf16.msra.mxu1 %v2876_v20 }
  0xd9   :  { %2361 = vmatprep.subr.bf16.mxu1 %v2676_v0 }
  0xdb   :  { %2323 = vmatmul.mubr.msk.bf16.vlgmr.msra.gmra.mxu1 %vm165_vm3, %v2882_v21 }
  0xdc   :  { %2363 = vmatprep.mubr.msk.bf16.mxu1 %vm2677_vm0, %v2676_v0 }
 0x19b   :  { %v207_v26 = vpop.f32.mrf.mxu1 }
 0x19c   :  { %v208_v27 = vadd.f32 %v2904_v25, %v207_v26  ;;  %v2073_v26 = vld [vmem:[%s3520_s29 + $0x48] sm:$0xff] }
 0x19d   :  { %v2324_v28 = vpop.f32.mrf.mxu1 }
 0x19e   :  { %v213_v29 = vmax.f32 %v208_v27, 0.0  ;;  %v2072_v27 = vld [vmem:[%s3520_s29 + $0x40] sm:$0xff] }
 0x19f   :  { %v210_v30 = vpop.f32.mrf.mxu1  ;;  %v3079_v28 = vld [vmem:[%s3523_s6] sm:$0xf] }
 0x1a0   :  { %2359 = vmatmul.mubr.f32.vlgmr.msra.gmra.mxu0 %v213_v29 }
 0x1a1   :  { %v2325_v31 = vpop.f32.mrf.mxu1  ;;  %2429 = vmatprep.mubr.msk.bf16.mxu0 %vm2677_vm0, %v2676_v0 }
 0x260   :  { %v296_v32 = vpop.f32.mrf.mxu0 }
 0x261   :  { %v300_v33 = vpack.c.bf16 %v296_v32, %v296_v32 }
 0x262   :  { %v2360_v34 = vpop.f32.mrf.mxu0 }
 0x263   :  { %v308_v35 = vsel %vm169_vm2, %v300_v33, 0 }
 0x264   :  { %2362 = vmatpush3.bf16.msra.mxu1 %v308_v35 }
 0x265   :  { %2367 = vmatprep.subr.mxu1 %v2676_v0 }
 0x267   :  { %2364 = vmatmul.mubr.msk.bf16.vlgmr.msra.gmra.mxu1 %vm165_vm3, %v2882_v21 }
 0x268   :  { %2368 = vmatpush3.msra.mxu1 %v358_v36  ;;  %2383 = vmatprep.mubr.msk.f32.mxu1 %vm2677_vm0, %v2676_v0 }
 0x269   :  { %2369 = vmatprep.subr.mxu1 %v2676_v0 }
 0x26a   :  { %2370 = vmatpush3.msra.mxu1 %v357_v37 }
 0x26b   :  { %2371 = vmatprep.subr.mxu1 %v2676_v0 }
 0x26c   :  { %2372 = vmatpush3.msra.mxu1 %v356_v38 }
 0x26d   :  { %2373 = vmatprep.subr.mxu1 %v2676_v0 }
 0x26e   :  { %2374 = vmatpush3.msra.mxu1 %v355_v39 }
 0x26f   :  { %2375 = vmatprep.subr.mxu1 %v2676_v0 }
 0x270   :  { %2376 = vmatpush3.msra.mxu1 %v354_v40 }
 0x271   :  { %2377 = vmatprep.subr.mxu1 %v2676_v0 }
 0x272   :  { %2378 = vmatpush3.msra.mxu1 %v353_v41 }
 0x273   :  { %2379 = vmatprep.subr.mxu1 %v2676_v0 }
 0x274   :  { %2380 = vmatpush3.msra.mxu1 %v352_v42 }
 0x275   :  { %2381 = vmatprep.subr.mxu1 %v2676_v0 }
 0x276   :  { %2382 = vmatpush3.msra.mxu1 %v351_v43 }
 0x277   :  { %2386 = vmatprep.subr.bf16.mxu1 %v2676_v0 }
 0x327   :  { %v344_v45 = vpop.f32.mrf.mxu1 }
 0x328   :  { %v345_v46 = vadd.f32 %v2950_v44, %v344_v45 }
 0x329   :  { %v2365_v47 = vpop.f32.mrf.mxu1 }
 0x32a   :  { %v350_v48 = vmax.f32 %v345_v46, 0.0  ;;  %v2099_v46 = vld [vmem:[%s3517_s3 + $0x178] sm:$0xff]  ;;  %v2098_v47 = vld [vmem:[%s3517_s3 + $0x170] sm:$0xff] }
 0x32b   :  { %v347_v49 = vpop.f32.mrf.mxu1 }
 0x32c   :  { %2384 = vmatmul.mubr.msk.f32.vlgmr.msra.gmra.mxu1 %vm359_vm4, %v350_v48  ;;  %v2097_v48 = vld [vmem:[%s3517_s3 + $0x168] sm:$0xff]  ;;  %v2095_v49 = vld [vmem:[%s3517_s3 + $0x158] sm:$0xff] }
 0x32d   :  { %2387 = vmatpush3.bf16.msra.mxu1 %v2876_v20  ;;  %v2366_v50 = vpop.f32.mrf.mxu1  ;;  %2388 = vmatprep.mubr.msk.bf16.mxu1 %vm2677_vm0, %v2676_v0 }
 0x32e   :  { %2392 = vmatprep.subr.mxu1 %v2676_v0  ;;  %v2094_v50 = vld [vmem:[%s3517_s3 + $0x150] sm:$0xff] }
 0x330   :  { %2389 = vmatmul.mubr.msk.bf16.vlgmr.msra.gmra.mxu1 %vm165_vm3, %v2960_v51 }
 0x331   :  { %2393 = vmatpush3.msra.mxu1 %v2070_v52  ;;  %2424 = vmatprep.mubr.msk.f32.mxu1 %vm2677_vm0, %v2676_v0  ;;  %v2092_v52 = vld [vmem:[%s3517_s3 + $0x140] sm:$0xff] }
 0x332   :  { %2394 = vmatprep.subr.mxu1 %v2676_v0 }
 0x333   :  { %2395 = vmatpush3.msra.mxu1 %v2069_v53  ;;  %v2091_v53 = vld [vmem:[%s3517_s3 + $0x138] sm:$0xff] }
 0x334   :  { %2396 = vmatprep.subr.mxu1 %v2676_v0 }
 0x335   :  { %2397 = vmatpush3.msra.mxu1 %v2068_v54  ;;  %v2090_v54 = vld [vmem:[%s3517_s3 + $0x130] sm:$0xff] }
 0x336   :  { %2398 = vmatprep.subr.mxu1 %v2676_v0 }
 0x337   :  { %2399 = vmatpush3.msra.mxu1 %v2067_v55  ;;  %v2089_v55 = vld [vmem:[%s3517_s3 + $0x128] sm:$0xff] }
 0x338   :  { %2400 = vmatprep.subr.mxu1 %v2676_v0 }
 0x339   :  { %2401 = vmatpush3.msra.mxu1 %v2066_v56  ;;  %v2088_v56 = vld [vmem:[%s3517_s3 + $0x120] sm:$0xff] }
 0x33a   :  { %2402 = vmatprep.subr.mxu1 %v2676_v0 }
 0x33b   :  { %2403 = vmatpush3.msra.mxu1 %v2065_v57  ;;  %v2087_v57 = vld [vmem:[%s3517_s3 + $0x118] sm:$0xff] }
 0x33c   :  { %2404 = vmatprep.subr.mxu1 %v2676_v0 }
 0x33d   :  { %2405 = vmatpush3.msra.mxu1 %v2064_v58 }
 0x33e   :  { %2406 = vmatprep.subr.mxu1 %v2676_v0 }
 0x33f   :  { %2407 = vmatpush3.msra.mxu1 %v2063_v59  ;;  %v2086_v59 = vld [vmem:[%s3517_s3 + $0x110] sm:$0xff] }
 0x340   :  { %2408 = vmatprep.subr.mxu1 %v2676_v0 }
 0x341   :  { %2409 = vmatpush3.msra.mxu1 %v2062_v60  ;;  %v2085_v60 = vld [vmem:[%s3517_s3 + $0x108] sm:$0xff] }
 0x342   :  { %2410 = vmatprep.subr.mxu1 %v2676_v0 }
 0x343   :  { %2411 = vmatpush3.msra.mxu1 %v2061_v61 }
 0x344   :  { %2412 = vmatprep.subr.mxu1 %v2676_v0 }
 0x345   :  { %2413 = vmatpush3.msra.mxu1 %v2060_v62  ;;  %v2084_v62 = vld [vmem:[%s3517_s3 + $0x100] sm:$0xff] }
 0x346   :  { %2414 = vmatprep.subr.mxu1 %v2676_v0 }
 0x347   :  { %2415 = vmatpush3.msra.mxu1 %v2059_v63 }
 0x348   :  { %2416 = vmatprep.subr.mxu1 %v2676_v0 }
 0x349   :  { %2417 = vmatpush3.msra.mxu1 %v2058_v1 }
 0x34a   :  { %2418 = vmatprep.subr.mxu1 %v2676_v0 }
 0x34b   :  { %2419 = vmatpush3.msra.mxu1 %v2057_v2 }
 0x34c   :  { %2420 = vmatprep.subr.mxu1 %v2676_v0 }
 0x34d   :  { %2421 = vmatpush3.msra.mxu1 %v2056_v3 }
 0x34e   :  { %2422 = vmatprep.subr.mxu1 %v2676_v0 }
 0x34f   :  { %2423 = vmatpush3.msra.mxu1 %v2055_v4 }
 0x350   :  { %2464 = vmatprep.subr.bf16.mxu1 %v2676_v0 }
 0x3ec   :  { %v3031_v5 = vpop.f32.mrf.mxu1 }
 0x3ed   :  { %v433_v42 = vpack.c.bf16 %v3031_v5, %v3031_v5 }
 0x3ee   :  { %v2385_v6 = vpop.f32.mrf.mxu1 }
 0x3ef   :  { %v738_v45 = vsel %vm169_vm2, %v433_v42, 0  ;;  %v2123_v42 = vld [vmem:[%s3517_s3 + $0x1d8] sm:$0xff] }
 0x3f0   :  { %v472_v7 = vpop.f32.mrf.mxu1 }
 0x3f1   :  { %v473_v8 = vadd.f32 %v2904_v25, %v472_v7 }
 0x3f2   :  { %v2390_v9 = vpop.f32.mrf.mxu1 }
 0x3f3   :  { %v478_v10 = vmax.f32 %v473_v8, 0.0 }
 0x3f4   :  { %v475_v11 = vpop.f32.mrf.mxu1 }
 0x3f5   :  { %2425 = vmatmul.mubr.f32.vlgmr.msra.gmra.mxu1 %v478_v10 }
 0x3f6   :  { %2465 = vmatpush3.bf16.msra.mxu1 %v2876_v20  ;;  %v2391_v12 = vpop.f32.mrf.mxu1  ;;  %2466 = vmatprep.mubr.msk.bf16.mxu1 %vm2677_vm0, %v2676_v0 }
 0x3f7   :  { %2505 = vmatprep.subr.bf16.mxu1 %v2676_v0  ;;  %v2108_v12 = vld [vmem:[%s3520_s29 + $0xb8] sm:$0xff] }
 0x3f9   :  { %2467 = vmatmul.mubr.msk.bf16.vlgmr.msra.gmra.mxu1 %vm165_vm3, %v3079_v28 }
 0x3fa   :  { %2507 = vmatprep.mubr.msk.bf16.mxu1 %vm2677_vm0, %v2676_v0 }
 0x4b5   :  { %v562_v13 = vpop.f32.mrf.mxu1 }
 0x4b6   :  { %v566_v14 = vpack.c.bf16 %v562_v13, %v562_v13  ;;  %v2107_v13 = vld [vmem:[%s3520_s29 + $0xb0] sm:$0xff] }
 0x4b7   :  { %v2426_v15 = vpop.f32.mrf.mxu1 }
 0x4b8   :  { %v568_v16 = vsel %vm169_vm2, %v566_v14, 0  ;;  %v2106_v14 = vld [vmem:[%s3520_s29 + $0xa8] sm:$0xff]  ;;  %v2105_v15 = vld [vmem:[%s3520_s29 + $0xa0] sm:$0xff] }
 0x4b9   :  { %2428 = vmatpush3.bf16.msra.mxu0 %v568_v16  ;;  %v818_v35 = vpop.f32.mrf.mxu1  ;;  %v2104_v16 = vld [vmem:[%s3520_s29 + $0x98] sm:$0xff] }
 0x4ba   :  { %2433 = vmatprep.subr.mxu0 %v2676_v0  ;;  %v819_v58 = vadd.f32 %v2904_v25, %v818_v35 }
 0x4bb   :  { %v2468_v36 = vpop.f32.mrf.mxu1 }
 0x4bc   :  { %2430 = vmatmul.mubr.msk.bf16.vlgmr.msra.gmra.mxu0 %vm165_vm3, %v2960_v51  ;;  %v824_v61 = vmax.f32 %v819_v58, 0.0 }
 0x4bd   :  { %2434 = vmatpush3.msra.mxu0 %v2079_v17  ;;  %2449 = vmatprep.mubr.msk.f32.mxu0 %vm2677_vm0, %v2676_v0  ;;  %v821_v37 = vpop.f32.mrf.mxu1  ;;  %v2103_v17 = vld [vmem:[%s3520_s29 + $0x90] sm:$0xff] }
 0x4be   :  { %2435 = vmatprep.subr.mxu0 %v2676_v0 }
 0x4bf   :  { %2436 = vmatpush3.msra.mxu0 %v2078_v18  ;;  %v2469_v38 = vpop.f32.mrf.mxu1  ;;  %v2102_v18 = vld [vmem:[%s3520_s29 + $0x88] sm:$0xff] }
 0x4c0   :  { %2437 = vmatprep.subr.mxu0 %v2676_v0 }
 0x4c1   :  { %2438 = vmatpush3.msra.mxu0 %v2077_v19  ;;  %v2101_v19 = vld [vmem:[%s3520_s29 + $0x80] sm:$0xff] }
 0x4c2   :  { %2439 = vmatprep.subr.mxu0 %v2676_v0 }
 0x4c3   :  { %2440 = vmatpush3.msra.mxu0 %v2076_v22  ;;  %v3215_v22 = vld [vmem:[%s3487_s4] sm:$0xf] }
 0x4c4   :  { %2441 = vmatprep.subr.mxu0 %v2676_v0 }
 0x4c5   :  { %2442 = vmatpush3.msra.mxu0 %v2075_v23 }
 0x4c6   :  { %2443 = vmatprep.subr.mxu0 %v2676_v0 }
 0x4c7   :  { %2444 = vmatpush3.msra.mxu0 %v2074_v24 }
 0x4c8   :  { %2445 = vmatprep.subr.mxu0 %v2676_v0 }
 0x4c9   :  { %2446 = vmatpush3.msra.mxu0 %v2073_v26 }
 0x4ca   :  { %2447 = vmatprep.subr.mxu0 %v2676_v0 }
 0x4cb   :  { %2448 = vmatpush3.msra.mxu0 %v2072_v27 }
 0x4cc   :  { %2452 = vmatprep.subr.bf16.mxu0 %v2676_v0 }
 0x57c   :  { %v604_v29 = vpop.f32.mrf.mxu0 }
 0x57d   :  { %v605_v30 = vadd.f32 %v2950_v44, %v604_v29 }
 0x57e   :  { %v2431_v31 = vpop.f32.mrf.mxu0 }
 0x57f   :  { %v610_v32 = vmax.f32 %v605_v30, 0.0 }
 0x580   :  { %v607_v33 = vpop.f32.mrf.mxu0 }
 0x581   :  { %2450 = vmatmul.mubr.msk.f32.vlgmr.msra.gmra.mxu0 %vm359_vm4, %v610_v32 }
 0x582   :  { %v2432_v34 = vpop.f32.mrf.mxu0  ;;  %2454 = vmatprep.mubr.msk.bf16.mxu0 %vm2677_vm0, %v2676_v0 }
 0x641   :  { %v689_v39 = vpop.f32.mrf.mxu0 }
 0x642   :  { %v693_v40 = vpack.c.bf16 %v689_v39, %v689_v39  ;;  %v2127_v39 = vld [vmem:[%s3517_s3 + $0x1f8] sm:$0xff] }
 0x643   :  { %v2451_v41 = vpop.f32.mrf.mxu0 }
 0x644   :  { %v695_v43 = vsel %vm169_vm2, %v693_v40, 0  ;;  %v2126_v40 = vld [vmem:[%s3517_s3 + $0x1f0] sm:$0xff]  ;;  %v2125_v41 = vld [vmem:[%s3517_s3 + $0x1e8] sm:$0xff] }
 0x645   :  { %2453 = vmatpush3.bf16.msra.mxu0 %v695_v43  ;;  %v2122_v43 = vld [vmem:[%s3517_s3 + $0x1d0] sm:$0xff] }
 0x646   :  { %2458 = vmatprep.subr.bf16.mxu0 %v2676_v0 }
 0x648   :  { %2455 = vmatmul.mubr.msk.bf16.vlgmr.msra.gmra.mxu0 %vm165_vm3, %v2960_v51  ;;  %v2093_v51 = vld [vmem:[%s3517_s3 + $0x148] sm:$0xff] }
 0x649   :  { %2459 = vmatpush3.bf16.msra.mxu0 %v738_v45  ;;  %2460 = vmatprep.mubr.msk.bf16.mxu0 %vm2677_vm0, %v2676_v0  ;;  %v2121_v45 = vld [vmem:[%s3517_s3 + $0x1c8] sm:$0xff] }
 0x64a   :  { %2470 = vmatprep.subr.mxu0 %v2676_v0 }
 0x650   :  { %2461 = vmatmul.mubr.msk.bf16.vlgmr.msra.gmra.mxu0 %vm165_vm3, %v2882_v21  ;;  %v2096_v21 = vld [vmem:[%s3517_s3 + $0x160] sm:$0xff] }
 0x651   :  { %2471 = vmatpush3.msra.mxu0 %v2099_v46  ;;  %2502 = vmatprep.mubr.msk.f32.mxu0 %vm2677_vm0, %v2676_v0  ;;  %v2120_v46 = vld [vmem:[%s3517_s3 + $0x1c0] sm:$0xff] }
 0x652   :  { %2472 = vmatprep.subr.mxu0 %v2676_v0 }
 0x653   :  { %2473 = vmatpush3.msra.mxu0 %v2098_v47  ;;  %v2119_v47 = vld [vmem:[%s3517_s3 + $0x1b8] sm:$0xff] }
 0x654   :  { %2474 = vmatprep.subr.mxu0 %v2676_v0 }
 0x655   :  { %2475 = vmatpush3.msra.mxu0 %v2097_v48  ;;  %v2118_v48 = vld [vmem:[%s3517_s3 + $0x1b0] sm:$0xff] }
 0x656   :  { %2476 = vmatprep.subr.mxu0 %v2676_v0 }
 0x657   :  { %2477 = vmatpush3.msra.mxu0 %v2096_v21  ;;  %v2117_v21 = vld [vmem:[%s3517_s3 + $0x1a8] sm:$0xff] }
 0x658   :  { %2478 = vmatprep.subr.mxu0 %v2676_v0 }
 0x659   :  { %2479 = vmatpush3.msra.mxu0 %v2095_v49  ;;  %v2116_v49 = vld [vmem:[%s3517_s3 + $0x1a0] sm:$0xff] }
 0x65a   :  { %2480 = vmatprep.subr.mxu0 %v2676_v0 }
 0x65b   :  { %2481 = vmatpush3.msra.mxu0 %v2094_v50  ;;  %v2115_v50 = vld [vmem:[%s3517_s3 + $0x198] sm:$0xff] }
 0x65c   :  { %2482 = vmatprep.subr.mxu0 %v2676_v0 }
 0x65d   :  { %2483 = vmatpush3.msra.mxu0 %v2093_v51 }
 0x65e   :  { %2484 = vmatprep.subr.mxu0 %v2676_v0 }
 0x65f   :  { %2485 = vmatpush3.msra.mxu0 %v2092_v52  ;;  %v2114_v52 = vld [vmem:[%s3517_s3 + $0x190] sm:$0xff] }
 0x660   :  { %2486 = vmatprep.subr.mxu0 %v2676_v0 }
 0x661   :  { %2487 = vmatpush3.msra.mxu0 %v2091_v53  ;;  %v2113_v53 = vld [vmem:[%s3517_s3 + $0x188] sm:$0xff] }
 0x662   :  { %2488 = vmatprep.subr.mxu0 %v2676_v0 }
 0x663   :  { %2489 = vmatpush3.msra.mxu0 %v2090_v54 }
 0x664   :  { %2490 = vmatprep.subr.mxu0 %v2676_v0 }
 0x665   :  { %2491 = vmatpush3.msra.mxu0 %v2089_v55 }
 0x666   :  { %2492 = vmatprep.subr.mxu0 %v2676_v0 }
 0x667   :  { %2493 = vmatpush3.msra.mxu0 %v2088_v56 }
 0x668   :  { %2494 = vmatprep.subr.mxu0 %v2676_v0 }
 0x669   :  { %2495 = vmatpush3.msra.mxu0 %v2087_v57 }
 0x66a   :  { %2496 = vmatprep.subr.mxu0 %v2676_v0 }
 0x66b   :  { %2497 = vmatpush3.msra.mxu0 %v2086_v59 }
 0x66c   :  { %2498 = vmatprep.subr.mxu0 %v2676_v0 }
 0x66d   :  { %2499 = vmatpush3.msra.mxu0 %v2085_v60 }
 0x66e   :  { %2500 = vmatprep.subr.mxu0 %v2676_v0 }
 0x66f   :  { %2501 = vmatpush3.msra.mxu0 %v2084_v62 }
 0x670   :  { %2503 = vmatmul.mubr.f32.vlgmr.msra.gmra.mxu0 %v824_v61  ;;  %2536 = vmatprep.subr.bf16.mxu0 %v2676_v0 }
 0x671   :  { %2537 = vmatpush3.bf16.msra.mxu0 %v2876_v20  ;;  %2538 = vmatprep.mubr.msk.bf16.mxu0 %vm2677_vm0, %v2676_v0 }
 0x672   :  { %2577 = vmatprep.subr.bf16.mxu0 %v2676_v0 }
 0x674   :  { %2539 = vmatmul.mubr.msk.bf16.vlgmr.msra.gmra.mxu0 %vm165_vm3, %v3215_v22 }
 0x675   :  { %2579 = vmatprep.mubr.msk.bf16.mxu0 %vm2677_vm0, %v2676_v0 }
 0x708   :  { %v731_v63 = vpop.f32.mrf.mxu0 }
 0x70a   :  { %v2456_v1 = vpop.f32.mrf.mxu0 }
 0x70b   :  { %v2136_v1 = vld [vmem:[%s3520_s29 + $0xf8] sm:$0xff] }
 0x70c   :  { %v734_v2 = vpop.f32.mrf.mxu0 }
 0x70d   :  { %v2135_v2 = vld [vmem:[%s3520_s29 + $0xf0] sm:$0xff] }
 0x70e   :  { %v2457_v3 = vpop.f32.mrf.mxu0 }
 0x70f   :  { %v2134_v3 = vld [vmem:[%s3520_s29 + $0xe8] sm:$0xff] }
 0x710   :  { %v774_v4 = vpop.f32.mrf.mxu0 }
 0x711   :  { %v3172_v5 = vadd.f32 %v774_v4, %v731_v63  ;;  %v2133_v4 = vld [vmem:[%s3520_s29 + $0xe0] sm:$0xff] }
 0x712   :  { %v2462_v6 = vpop.f32.mrf.mxu0 }
 0x713   :  { %v2131_v6 = vld [vmem:[%s3520_s29 + $0xd0] sm:$0xff] }
 0x714   :  { %v777_v7 = vpop.f32.mrf.mxu0 }
 0x715   :  { %v2130_v7 = vld [vmem:[%s3520_s29 + $0xc8] sm:$0xff] }
 0x716   :  { %v2463_v8 = vpop.f32.mrf.mxu0 }
 0x717   :  { %v2129_v8 = vld [vmem:[%s3520_s29 + $0xc0] sm:$0xff] }
 0x730   :  { %v908_v9 = vpop.f32.mrf.mxu0 }
 0x731   :  { %v912_v10 = vpack.c.bf16 %v908_v9, %v908_v9 }
 0x732   :  { %v2504_v11 = vpop.f32.mrf.mxu0 }
 0x733   :  { %v914_v20 = vsel %vm169_vm2, %v912_v10, 0 }
 0x734   :  { %2506 = vmatpush3.bf16.msra.mxu1 %v914_v20  ;;  %v1122_v31 = vpop.f32.mrf.mxu0 }
 0x735   :  { %2511 = vmatprep.subr.mxu1 %v2676_v0  ;;  %v1123_v51 = vadd.f32 %v2904_v25, %v1122_v31  ;;  %v2112_v25 = vld [vmem:[%s3517_s3 + $0x180] sm:$0xff] }
 0x736   :  { %v2540_v32 = vpop.f32.mrf.mxu0 }
 0x737   :  { %2508 = vmatmul.mubr.msk.bf16.vlgmr.msra.gmra.mxu1 %vm165_vm3, %v3079_v28  ;;  %v1128_v54 = vmax.f32 %v1123_v51, 0.0  ;;  %v1483_v32 = vld [vmem:[%s3490_s13 + $0x10] sm:$0xff] }
 0x738   :  { %2512 = vmatpush3.msra.mxu1 %v2108_v12  ;;  %2527 = vmatprep.mubr.msk.f32.mxu1 %vm2677_vm0, %v2676_v0  ;;  %v1125_v33 = vpop.f32.mrf.mxu0 }
 0x739   :  { %2513 = vmatprep.subr.mxu1 %v2676_v0 }
 0x73a   :  { %2514 = vmatpush3.msra.mxu1 %v2107_v13  ;;  %v2541_v34 = vpop.f32.mrf.mxu0 }
 0x73b   :  { %2515 = vmatprep.subr.mxu1 %v2676_v0  ;;  %v1482_v34 = vld [vmem:[%s3490_s13 + $0x8] sm:$0xff] }
 0x73c   :  { %2516 = vmatpush3.msra.mxu1 %v2106_v14  ;;  %v1399_v14 = vld [vmem:[%s3488_s11 + $0x18] sm:$0xff] }
 0x73d   :  { %2517 = vmatprep.subr.mxu1 %v2676_v0 }
 0x73e   :  { %2518 = vmatpush3.msra.mxu1 %v2105_v15  ;;  %v1398_v15 = vld [vmem:[%s3488_s11 + $0x10] sm:$0xff] }
 0x73f   :  { %2519 = vmatprep.subr.mxu1 %v2676_v0 }
 0x740   :  { %2520 = vmatpush3.msra.mxu1 %v2104_v16 }
 0x741   :  { %2521 = vmatprep.subr.mxu1 %v2676_v0 }
 0x742   :  { %2522 = vmatpush3.msra.mxu1 %v2103_v17 }
 0x743   :  { %2523 = vmatprep.subr.mxu1 %v2676_v0 }
 0x744   :  { %2524 = vmatpush3.msra.mxu1 %v2102_v18 }
 0x745   :  { %2525 = vmatprep.subr.mxu1 %v2676_v0 }
 0x746   :  { %2526 = vmatpush3.msra.mxu1 %v2101_v19  ;;  %v1397_v19 = vld [vmem:[%s3488_s11 + $0x8] sm:$0xff] }
 0x747   :  { %2530 = vmatprep.subr.bf16.mxu1 %v2676_v0 }
 0x7f7   :  { %v950_v23 = vpop.f32.mrf.mxu1 }
 0x7f8   :  { %v951_v24 = vadd.f32 %v2950_v44, %v950_v23  ;;  %v1396_v23 = vld [vmem:[%s3488_s11] sm:$0xff] }
 0x7f9   :  { %v2509_v26 = vpop.f32.mrf.mxu1 }
 0x7fa   :  { %v956_v27 = vmax.f32 %v951_v24, 0.0 }
 0x7fb   :  { %v953_v29 = vpop.f32.mrf.mxu1 }
 0x7fc   :  { %2528 = vmatmul.mubr.msk.f32.vlgmr.msra.gmra.mxu1 %vm359_vm4, %v956_v27 }
 0x7fd   :  { %v2510_v30 = vpop.f32.mrf.mxu1  ;;  %2532 = vmatprep.mubr.msk.bf16.mxu1 %vm2677_vm0, %v2676_v0 }
 0x7fe   :  { %v1484_v30 = vld [vmem:[%s3490_s13 + $0x18] sm:$0xff] }
 0x8bc   :  { %v1035_v35 = vpop.f32.mrf.mxu1 }
 0x8bd   :  { %v1039_v36 = vpack.c.bf16 %v1035_v35, %v1035_v35  ;;  %v1481_v35 = vld [vmem:[%s3490_s13] sm:$0xff] }
 0x8be   :  { %v2529_v37 = vpop.f32.mrf.mxu1 }
 0x8bf   :  { %v1041_v38 = vsel %vm169_vm2, %v1039_v36, 0  ;;  %v1485_v36 = vld [vmem:[%s3491_s14] sm:$0xff] }
 0x8c0   :  { %2531 = vmatpush3.bf16.msra.mxu1 %v1041_v38  ;;  %v2140_v37 = vld [vmem:[%s3492_s12] ss:$0 sm:$0xff] }
 0x8c1   :  { %2542 = vmatprep.subr.mxu1 %v2676_v0 }
 0x8c3   :  { %2533 = vmatmul.mubr.msk.bf16.vlgmr.msra.gmra.mxu1 %vm165_vm3, %v3079_v28  ;;  %v2124_v28 = vld [vmem:[%s3517_s3 + $0x1e0] sm:$0xff] }
 0x8c4   :  { %2543 = vmatpush3.msra.mxu1 %v2127_v39  ;;  %2574 = vmatprep.mubr.msk.f32.mxu1 %vm2677_vm0, %v2676_v0 }
 0x8c5   :  { %2544 = vmatprep.subr.mxu1 %v2676_v0 }
 0x8c6   :  { %2545 = vmatpush3.msra.mxu1 %v2126_v40 }
 0x8c7   :  { %2546 = vmatprep.subr.mxu1 %v2676_v0 }
 0x8c8   :  { %2547 = vmatpush3.msra.mxu1 %v2125_v41 }
 0x8c9   :  { %2548 = vmatprep.subr.mxu1 %v2676_v0 }
 0x8ca   :  { %2549 = vmatpush3.msra.mxu1 %v2124_v28 }
 0x8cb   :  { %2550 = vmatprep.subr.mxu1 %v2676_v0 }
 0x8cc   :  { %2551 = vmatpush3.msra.mxu1 %v2123_v42  ;;  %v1641_v42 = vld [vmem:[%s3493_s16 + $0x18] sm:$0xff] }
 0x8cd   :  { %2552 = vmatprep.subr.mxu1 %v2676_v0 }
 0x8ce   :  { %2553 = vmatpush3.msra.mxu1 %v2122_v43  ;;  %v1640_v43 = vld [vmem:[%s3493_s16 + $0x10] sm:$0xff] }
 0x8cf   :  { %2554 = vmatprep.subr.mxu1 %v2676_v0 }
 0x8d0   :  { %2555 = vmatpush3.msra.mxu1 %v2121_v45  ;;  %v1639_v45 = vld [vmem:[%s3493_s16 + $0x8] sm:$0xff] }
 0x8d1   :  { %2556 = vmatprep.subr.mxu1 %v2676_v0 }
 0x8d2   :  { %2557 = vmatpush3.msra.mxu1 %v2120_v46  ;;  %v1638_v46 = vld [vmem:[%s3493_s16] sm:$0xff] }
 0x8d3   :  { %2558 = vmatprep.subr.mxu1 %v2676_v0 }
 0x8d4   :  { %2559 = vmatpush3.msra.mxu1 %v2119_v47 }
 0x8d5   :  { %2560 = vmatprep.subr.mxu1 %v2676_v0 }
 0x8d6   :  { %2561 = vmatpush3.msra.mxu1 %v2118_v48  ;;  %v2144_v48 = vld [vmem:[%s3494_s15] ss:$0 sm:$0xff] }
 0x8d7   :  { %2562 = vmatprep.subr.mxu1 %v2676_v0 }
 0x8d8   :  { %2563 = vmatpush3.msra.mxu1 %v2117_v21 }
 0x8d9   :  { %2564 = vmatprep.subr.mxu1 %v2676_v0 }
 0x8da   :  { %2565 = vmatpush3.msra.mxu1 %v2116_v49 }
 0x8db   :  { %2566 = vmatprep.subr.mxu1 %v2676_v0 }
 0x8dc   :  { %2567 = vmatpush3.msra.mxu1 %v2115_v50 }
 0x8dd   :  { %2568 = vmatprep.subr.mxu1 %v2676_v0 }
 0x8de   :  { %2569 = vmatpush3.msra.mxu1 %v2114_v52  ;;  %v1812_v52 = vld [vmem:[%s3495_s21] sm:$0xff] }
 0x8df   :  { %2570 = vmatprep.subr.mxu1 %v2676_v0 }
 0x8e0   :  { %2571 = vmatpush3.msra.mxu1 %v2113_v53 }
 0x8e1   :  { %2572 = vmatprep.subr.mxu1 %v2676_v0 }
 0x8e2   :  { %2573 = vmatpush3.msra.mxu1 %v2112_v25  ;;  %v1723_v25 = vld [vmem:[%s3496_s18] sm:$0xff] }
 0x8e3   :  { %2575 = vmatmul.mubr.f32.vlgmr.msra.gmra.mxu1 %v1128_v54  ;;  %2608 = vmatprep.subr.mxu1 %v2676_v0  ;;  %v1724_v54 = vld [vmem:[%s3496_s18 + $0x8] sm:$0xff] }
 0x8e4   :  { %2616 = vmatprep.mubr.msk.f32.mxu1 %vm2677_vm0, %v2676_v0  ;;  %2609 = vmatpush3.msra.mxu1 %v1399_v14 }
 0x8e5   :  { %2610 = vmatprep.subr.mxu1 %v2676_v0 }
 0x8e6   :  { %2611 = vmatpush3.msra.mxu1 %v1398_v15 }
 0x8e7   :  { %2612 = vmatprep.subr.mxu1 %v2676_v0 }
 0x8e8   :  { %2613 = vmatpush3.msra.mxu1 %v1397_v19 }
 0x8e9   :  { %2614 = vmatprep.subr.mxu1 %v2676_v0 }
 0x8ea   :  { %2615 = vmatpush3.msra.mxu1 %v1396_v23 }
 0x8eb   :  { %2624 = vmatprep.subr.mxu1 %v2676_v0 }
 0x983   :  { %v1077_v55 = vpop.f32.mrf.mxu1 }
 0x984   :  { %v3299_v56 = vadd.f32 %v1077_v55, %v3172_v5  ;;  %v2132_v5 = vld [vmem:[%s3520_s29 + $0xd8] sm:$0xff]  ;;  %v2145_v55 = vld [vmem:[%s3497_s17] ss:$0 sm:$0xff] }
 0x985   :  { %v2534_v57 = vpop.f32.mrf.mxu1 }
 0x987   :  { %v1080_v58 = vpop.f32.mrf.mxu1 }
 0x989   :  { %v2535_v59 = vpop.f32.mrf.mxu1 }
 0x9a3   :  { %v1212_v60 = vpop.f32.mrf.mxu1 }
 0x9a4   :  { %v1216_v61 = vpack.c.bf16 %v1212_v60, %v1212_v60  ;;  %v1810_v60 = vld [vmem:[%s3498_s20 + $0x18] sm:$0xff] }
 0x9a5   :  { %v2576_v62 = vpop.f32.mrf.mxu1 }
 0x9a6   :  { %v1218_v63 = vsel %vm169_vm2, %v1216_v61, 0  ;;  %v1809_v62 = vld [vmem:[%s3498_s20 + $0x10] sm:$0xff] }
 0x9a7   :  { %2578 = vmatpush3.bf16.msra.mxu0 %v1218_v63 }
 0x9a8   :  { %2583 = vmatprep.subr.mxu0 %v2676_v0 }
 0x9aa   :  { %2580 = vmatmul.mubr.msk.bf16.vlgmr.msra.gmra.mxu0 %vm165_vm3, %v3215_v22 }
 0x9ab   :  { %2584 = vmatpush3.msra.mxu0 %v2136_v1  ;;  %2599 = vmatprep.mubr.msk.f32.mxu0 %vm2677_vm0, %v2676_v0  ;;  %v1808_v1 = vld [vmem:[%s3498_s20 + $0x8] sm:$0xff] }
 0x9ac   :  { %2585 = vmatprep.subr.mxu0 %v2676_v0 }
 0x9ad   :  { %2586 = vmatpush3.msra.mxu0 %v2135_v2  ;;  %v1807_v2 = vld [vmem:[%s3498_s20] sm:$0xff] }
 0x9ae   :  { %2587 = vmatprep.subr.mxu0 %v2676_v0 }
 0x9af   :  { %2588 = vmatpush3.msra.mxu0 %v2134_v3 }
 0x9b0   :  { %2589 = vmatprep.subr.mxu0 %v2676_v0 }
 0x9b1   :  { %2590 = vmatpush3.msra.mxu0 %v2133_v4  ;;  %v1959_v4 = vld [vmem:[%s3499_s22] sm:$0xff] }
 0x9b2   :  { %2591 = vmatprep.subr.mxu0 %v2676_v0 }
 0x9b3   :  { %2592 = vmatpush3.msra.mxu0 %v2132_v5  ;;  %v2147_v5 = vld [vmem:[%s3500_s19] ss:$0 sm:$0xff] }
 0x9b4   :  { %2593 = vmatprep.subr.mxu0 %v2676_v0 }
 0x9b5   :  { %2594 = vmatpush3.msra.mxu0 %v2131_v6 }
 0x9b6   :  { %2595 = vmatprep.subr.mxu0 %v2676_v0 }
 0x9b7   :  { %2596 = vmatpush3.msra.mxu0 %v2130_v7 }
 0x9b8   :  { %2597 = vmatprep.subr.mxu0 %v2676_v0 }
 0x9b9   :  { %2598 = vmatpush3.msra.mxu0 %v2129_v8 }
 0x9ba   :  { %2602 = vmatprep.subr.bf16.mxu0 %v2676_v0 }
 0xa6a   :  { %v1254_v9 = vpop.f32.mrf.mxu0 }
 0xa6b   :  { %v1255_v10 = vadd.f32 %v2950_v44, %v1254_v9 }
 0xa6c   :  { %v2581_v11 = vpop.f32.mrf.mxu0 }
 0xa6d   :  { %v1260_v20 = vmax.f32 %v1255_v10, 0.0 }
 0xa6e   :  { %v1257_v12 = vpop.f32.mrf.mxu0 }
 0xa6f   :  { %2600 = vmatmul.mubr.msk.f32.vlgmr.msra.gmra.mxu0 %vm359_vm4, %v1260_v20  ;;  %v2152_v12 = vld [vmem:[%s3501_s23] ss:$0 sm:$0xff] }
 0xa70   :  { %v2582_v13 = vpop.f32.mrf.mxu0  ;;  %2604 = vmatprep.mubr.msk.bf16.mxu0 %vm2677_vm0, %v2676_v0 }
 0xb2f   :  { %v1339_v44 = vpop.f32.mrf.mxu0 }
 0xb30   :  { %v1343_v16 = vpack.c.bf16 %v1339_v44, %v1339_v44 }
 0xb31   :  { %v2601_v17 = vpop.f32.mrf.mxu0 }
 0xb32   :  { %v1345_v18 = vsel %vm169_vm2, %v1343_v16, 0 }
 0xb33   :  { %2603 = vmatpush3.bf16.msra.mxu0 %v1345_v18 }
 0xb34   :  { %2619 = vmatprep.subr.mxu0 %v2676_v0 }
 0xb36   :  { %2605 = vmatmul.mubr.msk.bf16.vlgmr.msra.gmra.mxu0 %vm165_vm3, %v3215_v22  ;;  %v2139_v22 = vld [vmem:[%s3489_s10] ss:$0 sm:$0xff] }
 0xb37   :  { %2621 = vmatprep.mubr.msk.f32.mxu0 %vm2677_vm0, %v2676_v0  ;;  %2620 = vmatpush3.msra.mxu0 %v1485_v36 }
 0xb38   :  { %2635 = vmatprep.subr.mxu0 %v2676_v0 }
 0xbf6   :  { %v1381_v24 = vpop.f32.mrf.mxu0 }
 0xbf7   :  { %v1387_v26 = vadd.f32 %v1381_v24, %v3299_v56 }
 0xbf8   :  { %v2606_v27 = vpop.f32.mrf.mxu0 }
 0xbf9   :  { %v3369_v29 = vadd.f32 %v2139_v22, %v1387_v26 }
 0xbfa   :  { %v1384_v31 = vpop.f32.mrf.mxu0 }
 0xbfb   :  { %2617 = vmatmul.mubr.msk.f32.vlgmr.msra.gmra.mxu1 %vm1407_vm5, %v3369_v29  ;;  %v1806_v3 = vmax.f32 %v3369_v29, 0.0 }
 0xbfc   :  { %2625 = vmatpush3.msra.mxu1 %v1484_v30  ;;  %v2607_v33 = vpop.f32.mrf.mxu0  ;;  %2632 = vmatprep.mubr.msk.f32.mxu1 %vm2677_vm0, %v2676_v0 }
 0xbfd   :  { %2626 = vmatprep.subr.mxu1 %v2676_v0 }
 0xbfe   :  { %2627 = vmatpush3.msra.mxu1 %v1483_v32 }
 0xbff   :  { %2628 = vmatprep.subr.mxu1 %v2676_v0 }
 0xc00   :  { %2629 = vmatpush3.msra.mxu1 %v1482_v34 }
 0xc01   :  { %2630 = vmatprep.subr.mxu1 %v2676_v0 }
 0xc02   :  { %2631 = vmatpush3.msra.mxu1 %v1481_v35 }
 0xc03   :  { %2633 = vmatmul.mubr.msk.f32.vlgmr.msra.gmra.mxu1 %vm1407_vm5, %v3369_v29  ;;  %2646 = vmatprep.subr.mxu1 %v2676_v0 }
 0xc04   :  { %2650 = vmatprep.mubr.msk.f32.mxu1 %vm2677_vm0, %v2676_v0  ;;  %2647 = vmatpush3.msra.mxu1 %v1724_v54 }
 0xc05   :  { %2648 = vmatprep.subr.mxu1 %v2676_v0 }
 0xc06   :  { %2649 = vmatpush3.msra.mxu1 %v1723_v25 }
 0xc07   :  { %2658 = vmatprep.subr.mxu1 %v2676_v0 }
 0xcbb   :  { %v1477_v38 = vpop.f32.mrf.mxu1 }
 0xcbc   :  { %v1478_v39 = vadd.f32 %v2140_v37, %v1477_v38 }
 0xcbd   :  { %v2618_v40 = vpop.f32.mrf.mxu1 }
 0xcbe   :  { %2622 = vmatmul.mubr.msk.f32.vlgmr.msra.gmra.mxu0 %vm165_vm3, %v1478_v39  ;;  %v1811_v53 = vmax.f32 %v1478_v39, 0.0 }
 0xcbf   :  { %2643 = vmatprep.mubr.msk.f32.mxu0 %vm2677_vm0, %v2676_v0  ;;  %2636 = vmatpush3.msra.mxu0 %v1641_v42 }
 0xcc0   :  { %2637 = vmatprep.subr.mxu0 %v2676_v0 }
 0xcc1   :  { %2638 = vmatpush3.msra.mxu0 %v1640_v43 }
 0xcc2   :  { %2639 = vmatprep.subr.mxu0 %v2676_v0 }
 0xcc3   :  { %v1625_v41 = vpop.f32.mrf.mxu1  ;;  %2640 = vmatpush3.msra.mxu0 %v1639_v45 }
 0xcc4   :  { %2641 = vmatprep.subr.mxu0 %v2676_v0 }
 0xcc5   :  { %v2634_v28 = vpop.f32.mrf.mxu1  ;;  %2642 = vmatpush3.msra.mxu0 %v1638_v46 }
 0xcc6   :  { %2653 = vmatprep.subr.mxu0 %v2676_v0 }
 0xd7e   :  { %v1555_v47 = vpop.f32.mrf.mxu0 }
 0xd7f   :  { %v1626_v21 = vadd.f32 %v1625_v41, %v1555_v47 }
 0xd80   :  { %v2623_v49 = vpop.f32.mrf.mxu0 }
 0xd81   :  { %v1636_v50 = vadd.f32 %v2144_v48, %v1626_v21 }
 0xd83   :  { %v1637_v51 = vmax.f32 %v1636_v50, 0.0 }
 0xd85   :  { %2644 = vmatmul.mubr.msk.f32.vlgmr.msra.gmra.mxu0 %vm1407_vm5, %v1637_v51 }
 0xd86   :  { %2654 = vmatpush3.msra.mxu0 %v1812_v52  ;;  %2655 = vmatprep.mubr.msk.f32.mxu0 %vm2677_vm0, %v2676_v0 }
 0xd87   :  { %2669 = vmatprep.subr.mxu0 %v2676_v0 }
 0xd89   :  { %2656 = vmatmul.mubr.msk.f32.vlgmr.msra.gmra.mxu0 %vm165_vm3, %v1811_v53 }
 0xd8a   :  { %2671 = vmatprep.mubr.msk.f32.mxu0 %vm2677_vm0, %v2676_v0  ;;  %2670 = vmatpush3.msra.mxu0 %v1959_v4 }
 0xe45   :  { %v1718_v56 = vpop.f32.mrf.mxu0 }
 0xe46   :  { %v1719_v57 = vadd.f32 %v2145_v55, %v1718_v56 }
 0xe47   :  { %v2645_v58 = vpop.f32.mrf.mxu0 }
 0xe48   :  { %v1722_v59 = vmax.f32 %v1719_v57, 0.0 }
 0xe49   :  { %v1882_v61 = vpop.f32.mrf.mxu0 }
 0xe4a   :  { %2651 = vmatmul.mubr.msk.f32.vlgmr.msra.gmra.mxu1 %vm81_vm1, %v1722_v59 }
 0xe4b   :  { %2659 = vmatpush3.msra.mxu1 %v1810_v60  ;;  %v2657_v63 = vpop.f32.mrf.mxu0  ;;  %2666 = vmatprep.mubr.msk.f32.mxu1 %vm2677_vm0, %v2676_v0 }
 0xe4c   :  { %2660 = vmatprep.subr.mxu1 %v2676_v0 }
 0xe4d   :  { %2661 = vmatpush3.msra.mxu1 %v1809_v62 }
 0xe4e   :  { %2662 = vmatprep.subr.mxu1 %v2676_v0 }
 0xe4f   :  { %2663 = vmatpush3.msra.mxu1 %v1808_v1 }
 0xe50   :  { %2664 = vmatprep.subr.mxu1 %v2676_v0 }
 0xe51   :  { %2665 = vmatpush3.msra.mxu1 %v1807_v2 }
 0xe52   :  { %2667 = vmatmul.mubr.msk.f32.vlgmr.msra.gmra.mxu1 %vm1407_vm5, %v1806_v3 }
 0xf0a   :  { %v1801_v6 = vpop.f32.mrf.mxu1 }
 0xf0b   :  { %v1802_v7 = vadd.f32 %v2147_v5, %v1801_v6 }
 0xf0c   :  { %v2652_v8 = vpop.f32.mrf.mxu1 }
 0xf0d   :  { %v1805_v9 = vmax.f32 %v1802_v7, 0.0 }
 0xf0f   :  { %2672 = vmatmul.mubr.msk.f32.vlgmr.msra.gmra.mxu0 %vm165_vm3, %v1805_v9 }
 0xf12   :  { %v1955_v10 = vpop.f32.mrf.mxu1 }
 0xf13   :  { %v1956_v11 = vadd.f32 %v1955_v10, %v1882_v61 }
 0xf14   :  { %v2668_v0 = vpop.f32.mrf.mxu1 }
 0xfcf   :  { %v2029_v20 = vpop.f32.mrf.mxu0 }
 0xfd0   :  { %v2033_v13 = vadd.f32 %v2029_v20, %v1956_v11 }
 0xfd1   :  { %v2673_v14 = vpop.f32.mrf.mxu0 }
 0xfd2   :  { %v2041_v15 = vadd.f32 %v2152_v12, %v2033_v13 }
 0xfd4   :  { %2043 = vst.msk [vmem:[%s3502_s24] sm:$0xff] %vm2042_vm6, %v2041_v15 }

</bundles_post_ra>
